<compile_context>
chip_gen: v7x
topology: tpu7x:2x2x1
jax: 0.10.0
libtpu: 0.0.40
codegen_flags: <defaults>
</compile_context>

<pallas_src>
import numpy as np

import jax
import jax.numpy as jnp
from jax.experimental import pallas as pl
from jax.experimental.pallas import tpu as pltpu


def _round_up(a, b):
    return ((a + b - 1) // b) * b


# -----------------------------------------------------------------------------
# Pallas kernel 1: anti-alias blur + fused decimation as two MXU matmuls
# (ImagePyramide / AntiAliasInterpolation2d: pad -> conv2d -> ::inv decimation)
# -----------------------------------------------------------------------------
def _blur_mm_kernel(x_ref, kh_ref, kwt_ref, o_ref):
    img = x_ref[0]                                                  # (H_in, W_in)
    tmp = jnp.dot(kh_ref[...], img, preferred_element_type=jnp.float32)
    o_ref[0] = jnp.dot(tmp, kwt_ref[...], preferred_element_type=jnp.float32)


def antialias_downsample(x, scale):
    """AntiAliasInterpolation2d.forward (pad + conv2d + nearest decimation)."""
    if scale == 1.0:
        return x
    sigma = (1.0 / scale - 1.0) / 2.0
    ks = 2 * round(sigma * 4) + 1
    ka = ks // 2
    kb = ka - 1 if ks % 2 == 0 else ka
    ax = np.arange(ks, dtype=np.float64)
    mean = (ks - 1) / 2.0
    k1 = np.exp(-((ax - mean) ** 2) / (2.0 * sigma ** 2))
    k1 = (k1 / k1.sum()).astype(np.float32)                 # separable, normalized

    B, C, H, W = x.shape
    inv = int(round(1.0 / scale))
    H_out = -(-H // inv)
    W_out = -(-W // inv)
    N = B * C
    H_in = H + ka + kb
    W_in = W + ka + kb

    # lane-dense / sublane-aligned output padding -> unmasked vector stores
    H_out_p = _round_up(H_out, 8)
    W_out_p = _round_up(W_out, 128)

    # banded decimation-blur matrices:  out = Kh @ Xpad @ KwT   (MXU work)
    Kh = np.zeros((H_out_p, H_in), np.float32)
    KwT = np.zeros((W_in, W_out_p), np.float32)
    for i_out in range(H_out):
        Kh[i_out, i_out * inv:i_out * inv + ks] += k1
    for j_out in range(W_out):
        KwT[j_out * inv:j_out * inv + ks, j_out] += k1

    xp = jnp.pad(x.astype(jnp.float32),
                 ((0, 0), (0, 0), (ka, kb), (ka, kb))).reshape(N, H_in, W_in)

    out = pl.pallas_call(
        _blur_mm_kernel,
        out_shape=jax.ShapeDtypeStruct((N, H_out_p, W_out_p), jnp.float32),
        grid=(N,),
        in_specs=[pl.BlockSpec((1, H_in, W_in), lambda n: (n, 0, 0)),
                  pl.BlockSpec((H_out_p, H_in), lambda n: (0, 0)),
                  pl.BlockSpec((W_in, W_out_p), lambda n: (0, 0))],
        out_specs=pl.BlockSpec((1, H_out_p, W_out_p), lambda n: (n, 0, 0)),
        compiler_params=pltpu.CompilerParams(
            dimension_semantics=("parallel",),
            vmem_limit_bytes=32 * 1024 * 1024),
    )(xp, jnp.asarray(Kh), jnp.asarray(KwT))
    return out[:, :H_out, :W_out].reshape(B, C, H_out, W_out)


def image_pyramide(x, scales):
    out = {}
    for scale in scales:
        out['prediction_' + str(scale)] = antialias_downsample(x, float(scale))
    return out


# -----------------------------------------------------------------------------
# Pallas kernel 2: TPS warp of a dense coordinate grid, tiled over pixels
# (theta through SMEM, one coalesced (2B, TILE_P) store per tile)
# -----------------------------------------------------------------------------
def _make_tps_frame_kernel(B, CP, eps=1e-6):
    def kern(th_ref, cx_ref, cy_ref, ctrl_ref, out_ref):
        cx = cx_ref[...]                                    # (B, TP)
        cy = cy_ref[...]
        ctrl = ctrl_ref[...]                                # (B+2, CP)
        w = ctrl[0:B, :]                                    # (B, CP)
        px = ctrl[B:B + 1, :]                               # (1, CP)
        py = ctrl[B + 1:B + 2, :]
        dx = cx[:, None, :] - px[:, :, None]                # (B, CP, TP)
        dy = cy[:, None, :] - py[:, :, None]
        d = jnp.abs(dx) + jnp.abs(dy)                       # L1 (as in reference)
        r = jnp.sum(w[:, :, None] * (d * d) * jnp.log(d + eps), axis=1)  # (B, TP)
        rows = []
        for b in range(B):                                  # B static & tiny
            t00 = th_ref[6 * b + 0]
            t01 = th_ref[6 * b + 1]
            t02 = th_ref[6 * b + 2]
            t10 = th_ref[6 * b + 3]
            t11 = th_ref[6 * b + 4]
            t12 = th_ref[6 * b + 5]
            rows.append(t00 * cx[b:b + 1] + t01 * cy[b:b + 1] + t02 + r[b:b + 1])
            rows.append(t10 * cx[b:b + 1] + t11 * cy[b:b + 1] + t12 + r[b:b + 1])
        out_ref[...] = jnp.concatenate(rows, axis=0)        # ONE (2B, TP) store
    return kern


def tps_warp_frame(coords, theta, ctrl_pts, ctrl_params):
    """Pallas-tiled TPS warp of a dense grid.  coords (B, P, 2) -> (B, P, 2)."""
    coords = jnp.asarray(coords, jnp.float32)
    B, P, _ = coords.shape
    CP = int(ctrl_pts.shape[0])

    tile_p = 128 if P <= 2048 else 1024
    P_pad = _round_up(P, tile_p)
    n_tiles = P_pad // tile_p

    cx = jnp.zeros((B, P_pad), jnp.float32).at[:, :P].set(coords[..., 0])
    cy = jnp.zeros((B, P_pad), jnp.float32).at[:, :P].set(coords[..., 1])
    ctrl = jnp.concatenate(
        [jnp.asarray(ctrl_params, jnp.float32).reshape(B, CP),
         jnp.asarray(ctrl_pts, jnp.float32).T.reshape(2, CP)], axis=0)   # (B+2, CP)
    theta_flat = jnp.asarray(theta, jnp.float32).reshape(B * 6)

    out = pl.pallas_call(
        _make_tps_frame_kernel(B, CP),
        out_shape=jax.ShapeDtypeStruct((2 * B, P_pad), jnp.float32),
        grid=(n_tiles,),
        in_specs=[pl.BlockSpec(memory_space=pltpu.MemorySpace.SMEM),     # theta
                  pl.BlockSpec((B, tile_p), lambda t: (0, t)),
                  pl.BlockSpec((B, tile_p), lambda t: (0, t)),
                  pl.BlockSpec((B + 2, CP), lambda t: (0, 0))],
        out_specs=pl.BlockSpec((2 * B, tile_p), lambda t: (0, t)),
        compiler_params=pltpu.CompilerParams(
            dimension_semantics=("parallel",),
            vmem_limit_bytes=32 * 1024 * 1024),
    )(theta_flat, cx, cy, ctrl)

    out = out[:, :P].reshape(B, 2, P)
    return jnp.transpose(out, (0, 2, 1))                    # (B, P, 2)


def tps_warp_points(coords, theta, ctrl_pts, ctrl_params, with_jac=False,
                    eps=1e-6):
    """Plain-JAX TPS warp for tiny point sets (keypoints / landmarks, P~10).
    A Pallas launch for ~40 floats is pure overhead, so this stays in XLA."""
    coords = jnp.asarray(coords, jnp.float32)               # (B, P, 2)
    theta = jnp.asarray(theta, jnp.float32)                 # (B, 2, 3)
    ctrl_pts = jnp.asarray(ctrl_pts, jnp.float32)
    ctrl_params = jnp.asarray(ctrl_params, jnp.float32)

    affine = (jnp.einsum('bij,bpj->bpi', theta[:, :, :2], coords)
              + theta[:, :, 2][:, None, :])
    diff = coords[:, :, None, :] - ctrl_pts[None, None, :, :]   # (B,P,CP,2)
    d = jnp.abs(diff).sum(-1)                                    # L1, as reference
    logd = jnp.log(d + eps)
    res = jnp.einsum('bpc,bc->bp', d * d * logd, ctrl_params)
    warped = affine + res[..., None]
    if not with_jac:
        return warped
    # analytic jacobian (matches torch autograd of warp_coordinates)
    dphi = 2.0 * d * logd + (d * d) / (d + eps)
    gx = jnp.einsum('bpc,bc->bp', dphi * jnp.sign(diff[..., 0]), ctrl_params)
    gy = jnp.einsum('bpc,bc->bp', dphi * jnp.sign(diff[..., 1]), ctrl_params)
    j00 = theta[:, None, 0, 0] + gx
    j01 = theta[:, None, 0, 1] + gy
    j10 = theta[:, None, 1, 0] + gx
    j11 = theta[:, None, 1, 1] + gy
    jac = jnp.stack([jnp.stack([j00, j01], axis=-1),
                     jnp.stack([j10, j11], axis=-1)], axis=-2)   # (B, P, 2, 2)
    return warped, jac


# -----------------------------------------------------------------------------
# Pallas kernel 3: fused scalar-loss reduction with per-term segment
# accumulation (scalar-prefetched tile metadata, pl.when init, abs/sq branch)
# -----------------------------------------------------------------------------
def _loss_seg_kernel(tile_term_ref, tile_first_ref, tile_op_ref,
                     a_ref, b_ref, o_ref):
    t = pl.program_id(0)
    d = a_ref[...] - b_ref[...]                              # (TILE_R, 128)

    @pl.when(tile_first_ref[t] == 1)
    def _():
        o_ref[...] = jnp.zeros_like(o_ref)

    @pl.when(tile_op_ref[t] == 1)                            # sum((a-b)^2)
    def _():
        o_ref[...] += jnp.sum(d * d)

    @pl.when(tile_op_ref[t] == 0)                            # sum(|a-b|)
    def _():
        o_ref[...] += jnp.sum(jnp.abs(d))


def fused_loss_means(terms):
    """terms: list of (a, b, op) with op in {'abs','sq'}.  Returns (n,) means."""
    n = len(terms)
    counts = [int(np.prod(a.shape)) for a, _, _ in terms]
    rows = [-(-c // 128) for c in counts]
    tile_rows = max(8, min(512, _round_up(max(rows), 8)))
    term_tiles = [-(-r // tile_rows) for r in rows]          # per-term tile count

    def pack(v, n_tiles):
        flat = jnp.asarray(v, jnp.float32).reshape(-1)
        cap = n_tiles * tile_rows * 128
        flat = jnp.pad(flat, (0, cap - flat.shape[0]))
        return flat.reshape(n_tiles * tile_rows, 128)

    A = jnp.concatenate([pack(a, term_tiles[i])
                         for i, (a, _, _) in enumerate(terms)], axis=0)
    Bm = jnp.concatenate([pack(b, term_tiles[i])
                          for i, (_, b, _) in enumerate(terms)], axis=0)

    # static (trace-time) tile metadata -> SMEM via scalar prefetch
    tile_term = np.concatenate(
        [np.full(t, i, np.int32) for i, t in enumerate(term_tiles)])
    tile_first = np.concatenate(
        [np.asarray([1] + [0] * (t - 1), np.int32) for t in term_tiles])
    tile_op = np.concatenate(
        [np.full(t, 1 if terms[i][2] == 'sq' else 0, np.int32)
         for i, t in enumerate(term_tiles)])
    num_tiles = int(tile_term.shape[0])

    sums = pl.pallas_call(
        _loss_seg_kernel,
        out_shape=jax.ShapeDtypeStruct((n, 1, 1), jnp.float32),
        grid_spec=pltpu.PrefetchScalarGridSpec(
            num_scalar_prefetch=3,
            grid=(num_tiles,),
            in_specs=[pl.BlockSpec((tile_rows, 128),
                                   lambda t, tt, tf, to: (t, 0)),
                      pl.BlockSpec((tile_rows, 128),
                                   lambda t, tt, tf, to: (t, 0))],
            out_specs=pl.BlockSpec((1, 1, 1),
                                   lambda t, tt, tf, to: (tt[t], 0, 0))),
        compiler_params=pltpu.CompilerParams(
            dimension_semantics=("arbitrary",),
            vmem_limit_bytes=32 * 1024 * 1024),
    )(jnp.asarray(tile_term), jnp.asarray(tile_first), jnp.asarray(tile_op),
      A, Bm)
    return sums.reshape(n) / jnp.asarray(counts, jnp.float32)


# -----------------------------------------------------------------------------
# PCA landmark reconstruction — plain XLA (tiny matmul, <2% MXU utilization)
# -----------------------------------------------------------------------------
def pca_reconstruct(fc_out, example_landmark, pca, mean_lmark):
    lm = fc_out.astype(jnp.float32) + jnp.broadcast_to(
        jnp.asarray(example_landmark, jnp.float32).reshape(1, -1), fc_out.shape)
    return (lm @ jnp.asarray(pca, jnp.float32).T
            + jnp.asarray(mean_lmark, jnp.float32).reshape(1, -1))


# -----------------------------------------------------------------------------
# Glue: coordinate grid, random TPS transform, grid_sample, 2x2 inverse
# -----------------------------------------------------------------------------
def make_coordinate_grid(spatial_size):
    h, w = spatial_size
    x = jnp.arange(w, dtype=jnp.float32)
    y = jnp.arange(h, dtype=jnp.float32)
    x = 2.0 * (x / (w - 1)) - 1.0
    y = 2.0 * (y / (h - 1)) - 1.0
    yy = jnp.tile(y[:, None], (1, w))
    xx = jnp.tile(x[None, :], (h, 1))
    return jnp.stack([xx, yy], axis=2)            # (h, w, 2), last dim = (x, y)


class TransformJax:
    """Random TPS transform (deterministic keys) — Sec 3.3 equivariance."""

    def __init__(self, bs, key, sigma_affine, sigma_tps, points_tps):
        k1, k2 = jax.random.split(key)
        noise = sigma_affine * jax.random.normal(k1, (bs, 2, 3), jnp.float32)
        self.theta = noise + jnp.eye(2, 3, dtype=jnp.float32)[None]
        self.bs = bs
        self.control_points = make_coordinate_grid(
            (points_tps, points_tps)).reshape(-1, 2)
        self.control_params = sigma_tps * jax.random.normal(
            k2, (bs, points_tps ** 2), jnp.float32)

    def warp_coordinates(self, coords, with_jac=False):   # small point sets
        return tps_warp_points(coords, self.theta, self.control_points,
                               self.control_params, with_jac=with_jac)

    def inverse_warp_coordinates(self, coords):
        bottom = jnp.tile(jnp.array([[[0.0, 0.0, 1.0]]], jnp.float32),
                          (self.bs, 1, 1))
        full = jnp.concatenate([self.theta, bottom], axis=1)       # (B, 3, 3)
        inv_theta = jnp.linalg.inv(full)[:, :2, :]
        return tps_warp_points(coords, inv_theta, self.control_points,
                               self.control_params, with_jac=False)

    def transform_frame(self, frame):
        B, C, H, W = frame.shape
        grid = make_coordinate_grid((H, W)).reshape(1, H * W, 2)
        grid = jnp.broadcast_to(grid, (self.bs, H * W, 2))
        warped = tps_warp_frame(grid, self.theta, self.control_points,
                                self.control_params)
        return grid_sample_bilinear(frame, warped.reshape(self.bs, H, W, 2))


def _reflect_coord(x, size):
    """torch grid_sample reflection padding (align_corners=False)."""
    span = float(size)
    xa = jnp.abs(x + 0.5)
    extra = jnp.mod(xa, span)
    flips = jnp.floor(xa / span)
    x = jnp.where(jnp.mod(flips, 2.0) == 0.0, extra - 0.5, span - extra - 0.5)
    return jnp.clip(x, 0.0, size - 1.0)


def grid_sample_bilinear(img, grid):
    """Bilinear grid sample, NCHW, grid (B,H,W,2) in [-1,1] (x,y),
    padding_mode='reflection' (align_corners=False).  Clipping the +1 neighbor
    matches torch: after reflect+clip the only OOB corner has zero weight."""
    # TODO(synk): the 4 gathers stay in plain JAX; at real EAMM resolution this
    # should become a Pallas DMA-gather with scalar-prefetched row indices.
    B, C, H, W = img.shape
    x = ((grid[..., 0] + 1.0) * W - 1.0) / 2.0
    y = ((grid[..., 1] + 1.0) * H - 1.0) / 2.0
    x = _reflect_coord(x, W)
    y = _reflect_coord(y, H)
    x0 = jnp.floor(x)
    y0 = jnp.floor(y)
    wx = (x - x0)[:, None, :, :]
    wy = (y - y0)[:, None, :, :]
    flat = img.reshape(B, C, H * W)

    def gather(ix, iy):
        ix = jnp.clip(ix, 0, W - 1).astype(jnp.int32)
        iy = jnp.clip(iy, 0, H - 1).astype(jnp.int32)
        idx = (iy * W + ix).reshape(B, 1, H * W)
        g = jnp.take_along_axis(flat, jnp.broadcast_to(idx, (B, C, H * W)), axis=2)
        return g.reshape(B, C, H, W)

    v00 = gather(x0, y0)
    v01 = gather(x0 + 1, y0)
    v10 = gather(x0, y0 + 1)
    v11 = gather(x0 + 1, y0 + 1)
    return (v00 * (1 - wx) * (1 - wy) + v01 * wx * (1 - wy)
            + v10 * (1 - wx) * wy + v11 * wx * wy)


def _inv2x2(m):
    a = m[..., 0, 0]
    b = m[..., 0, 1]
    c = m[..., 1, 0]
    d = m[..., 1, 1]
    det = a * d - b * c
    row0 = jnp.stack([d, -b], axis=-1)
    row1 = jnp.stack([-c, a], axis=-1)
    return jnp.stack([row0, row1], axis=-2) / det[..., None, None]


def detach_kp(kp):
    return {k: jax.lax.stop_gradient(v) for k, v in kp.items()}


# -----------------------------------------------------------------------------
# Deterministic stubs for the externally-supplied sub-modules (glue).
# TODO(synk): kp_extractor / kp_extractor_a / audio_feature / generator /
#             discriminator / pretrained VGG19 are injected dependencies with no
#             definition in the reference file; synthetic deterministic versions
#             are used so the GeneratorFullModel loss math can run end-to-end.
# -----------------------------------------------------------------------------
K_KP = 10
C_IMG = 3
H_IMG = W_IMG = 16
SCALES = [1, 0.5]
DISC_SCALES = [1]

CONFIG = {
    'loss_weights': {
        'audio': 1.0,
        'perceptual': [1.0, 1.0, 1.0, 1.0, 1.0],
        'generator_gan': 1.0,
        'feature_matching': [1.0, 1.0, 1.0, 1.0],
        'equivariance_value': 10.0,
        'equivariance_jacobian': 10.0,
    },
    'transform_params': {'sigma_affine': 0.05, 'sigma_tps': 0.005, 'points_tps': 5},
}


def init_params(key):
    ks = jax.random.split(key, 16)
    F = C_IMG * (H_IMG // 4) * (W_IMG // 4)      # 48
    p = {}
    p['kp_Wv'] = 0.1 * jax.random.normal(ks[0], (F, K_KP * 2), jnp.float32)
    p['kp_Wj'] = 0.1 * jax.random.normal(ks[1], (F, K_KP * 4), jnp.float32)
    p['kp_Wh'] = 0.1 * jax.random.normal(ks[2], (F, K_KP * 64), jnp.float32)
    p['kpa_Wv'] = 0.1 * jax.random.normal(ks[3], (F, K_KP * 2), jnp.float32)
    p['kpa_Wj'] = 0.1 * jax.random.normal(ks[4], (F, K_KP * 4), jnp.float32)
    p['kpa_Wh'] = 0.1 * jax.random.normal(ks[5], (F, K_KP * 64), jnp.float32)
    p['aud_W'] = 0.05 * jax.random.normal(ks[6], (28 * 12 + 6, 16), jnp.float32)
    p['pca'] = 0.1 * jax.random.normal(ks[7], (212, 16), jnp.float32)      # U_106[:, :16]
    p['mean_lmark'] = 0.1 * jax.random.normal(ks[8], (212,), jnp.float32)  # mean_106
    vgg_dims = [(3, 8), (8, 8), (8, 16), (16, 16), (16, 16)]
    p['vgg_W'] = [0.2 * jax.random.normal(k, d, jnp.float32)
                  for k, d in zip(jax.random.split(ks[9], 5), vgg_dims)]
    disc_dims = [(3, 8), (8, 8), (8, 16), (16, 16)]
    p['disc_W'] = [0.2 * jax.random.normal(k, d, jnp.float32)
                   for k, d in zip(jax.random.split(ks[10], 4), disc_dims)]
    p['disc_Wout'] = 0.2 * jax.random.normal(ks[11], (16, 1), jnp.float32)
    return p


def kp_extractor(params, img, *args, prefix='kp'):
    B, C, H, W = img.shape
    pooled = img.reshape(B, C, H // 4, 4, W // 4, 4).mean(axis=(3, 5)).reshape(B, -1)
    value = jnp.tanh(pooled @ params[prefix + '_Wv']).reshape(B, K_KP, 2)
    jac = (jnp.eye(2, dtype=jnp.float32).reshape(1, 1, 2, 2)
           + 0.1 * jnp.tanh(pooled @ params[prefix + '_Wj']).reshape(B, K_KP, 2, 2))
    heat = jax.nn.softmax((pooled @ params[prefix + '_Wh']).reshape(B, K_KP, 64),
                          axis=-1).reshape(B, K_KP, 8, 8)
    return {'value': value, 'jacobian': jac, 'heatmap': heat}


def kp_extractor_a(params, img, *args):
    return kp_extractor(params, img, prefix='kpa')


def audio_feature(params, example_landmark, driving_audio, driving_pose):
    T = driving_audio.shape[0]
    feat = jnp.concatenate(
        [driving_audio.reshape(T, -1), driving_pose.reshape(T, -1)], axis=-1)
    fc_out = jnp.tanh(feat @ params['aud_W'])      # (T, 16)
    deco_out = jnp.zeros((T, 16), jnp.float32)
    return fc_out, deco_out


def generator_stub(params, driving_frame):
    # TODO(synk): `generated` is referenced but never assigned in the reference
    # forward; a deterministic stand-in generator is used.
    pred = jax.nn.sigmoid(2.0 * driving_frame - 1.0 + 0.1)
    return {'prediction': pred}


def vgg_stub(params, img):
    # TODO(synk): pretrained torchvision VGG19 weights unavailable; synthetic
    # deterministic 5-level feature pyramid (same normalization as Vgg19.forward).
    mean = jnp.array([0.485, 0.456, 0.406], jnp.float32).reshape(1, 3, 1, 1)
    std = jnp.array([0.229, 0.224, 0.225], jnp.float32).reshape(1, 3, 1, 1)
    h = (img - mean) / std
    feats = []
    for li, Wl in enumerate(params['vgg_W']):
        h = jax.nn.relu(jnp.einsum('bchw,cd->bdhw', h, Wl))
        feats.append(h)
        B, Cc, Hh, Ww = h.shape
        if li < 4 and Hh >= 2 and Ww >= 2:
            h = h.reshape(B, Cc, Hh // 2, 2, Ww // 2, 2).mean(axis=(3, 5))
    return feats


def discriminator_stub(params, pyramide, kp=None):
    out = {}
    for scale in DISC_SCALES:
        h = pyramide['prediction_' + str(scale)]
        fmaps = []
        for Wl in params['disc_W']:
            h = jax.nn.leaky_relu(jnp.einsum('bchw,cd->bdhw', h, Wl), 0.2)
            fmaps.append(h)
            B, Cc, Hh, Ww = h.shape
            if Hh >= 2 and Ww >= 2:
                h = h.reshape(B, Cc, Hh // 2, 2, Ww // 2, 2).mean(axis=(3, 5))
        out['feature_maps_%s' % scale] = fmaps
        out['prediction_map_%s' % scale] = jnp.einsum('bchw,cd->bdhw', h,
                                                      params['disc_Wout'])
    return out


# -----------------------------------------------------------------------------
# GeneratorFullModel.forward
# -----------------------------------------------------------------------------
def generator_full_model_forward(params, x, transform_key):
    lw = CONFIG['loss_weights']
    B, T = x['driving'].shape[:2]
    C, H, W = x['driving'].shape[2:]

    # per-frame keypoint extraction (external stub) — batched into one call
    drv_all = jnp.transpose(x['driving'], (1, 0, 2, 3, 4)).reshape(T * B, C, H, W)
    kp_all = kp_extractor(params, drv_all, x['driving_landmark'],
                          lw['equivariance_value'])
    # TODO(synk): reference indexes kp_driving (a list) as a dict; use last frame.
    kp_driving = {k: v[(T - 1) * B:] for k, v in kp_all.items()}
    kp_driving_a = kp_extractor_a(params, x['driving'][:, -1])
    # TODO(synk): kp_source / kp_source_a are undefined names in the reference
    # forward; computed from x['source'] here.
    kp_source = kp_extractor(params, x['source'])
    kp_source_a = kp_extractor_a(params, x['source'])

    # audio branch + PCA landmark reconstruction (plain XLA, f32)
    fc_out, _deco_out = audio_feature(params, x['example_landmark'],
                                      x['driving_audio'], x['driving_pose'])
    fake_lmark = pca_reconstruct(fc_out, x['example_landmark'],
                                 params['pca'], params['mean_lmark'])[None]

    generated = generator_stub(params, x['driving'][:, -1])
    generated['fake_lmark'] = fake_lmark

    # TODO(synk): reference feeds a 5-D tensor into conv2d (invalid); pyramid is
    # built from the last driving frame.  Real + generated share one blur call.
    driving_frame = x['driving'][:, -1]
    both = jnp.concatenate([driving_frame, generated['prediction']], axis=0)
    pyr_both = image_pyramide(both, SCALES)
    pyramide_real = {k: v[:B] for k, v in pyr_both.items()}
    pyramide_generated = {k: v[B:] for k, v in pyr_both.items()}

    # ---- collect all scalar loss terms; reduce them with ONE Pallas call ----
    terms = []   # (a, b, op)
    meta = []    # (loss_name, coefficient)

    def add_term(name, coeff, a, b, op='abs'):
        terms.append((a, b, op))
        meta.append((name, float(coeff)))

    sg = jax.lax.stop_gradient

    if lw['audio'] != 0:
        add_term('jacobian', 0.5 * lw['audio'],
                 sg(kp_source['jacobian']), sg(kp_source_a['jacobian']))
        add_term('jacobian', 0.5 * lw['audio'],
                 sg(kp_driving['jacobian']), kp_driving_a['jacobian'])
        add_term('heatmap', 0.5 * lw['audio'],
                 sg(kp_source['heatmap']), sg(kp_source_a['heatmap']))
        add_term('heatmap', 0.5 * lw['audio'],
                 sg(kp_driving['heatmap']), kp_driving_a['heatmap'])
        add_term('value', 0.5 * lw['audio'],
                 sg(kp_source['value']), sg(kp_source_a['value']))
        add_term('value', 0.5 * lw['audio'],
                 sg(kp_driving['value']), kp_driving_a['value'])

    if sum(lw['perceptual']) != 0:
        for scale in SCALES:
            x_vgg = vgg_stub(params, pyramide_generated['prediction_' + str(scale)])
            y_vgg = vgg_stub(params, pyramide_real['prediction_' + str(scale)])
            for i, weight in enumerate(lw['perceptual']):
                add_term('perceptual', weight, x_vgg[i], sg(y_vgg[i]))

    if lw['generator_gan'] != 0:
        d_gen = discriminator_stub(params, pyramide_generated,
                                   kp=detach_kp(kp_driving))
        d_real = discriminator_stub(params, pyramide_real,
                                    kp=detach_kp(kp_driving))
        for scale in DISC_SCALES:
            dmap = d_gen['prediction_map_%s' % scale]
            add_term('gen_gan', lw['generator_gan'],
                     jnp.ones_like(dmap), dmap, op='sq')   # mean((1 - d)^2)
        if sum(lw['feature_matching']) != 0:
            for scale in DISC_SCALES:
                key_name = 'feature_maps_%s' % scale
                for i, (a, b) in enumerate(zip(d_real[key_name], d_gen[key_name])):
                    if lw['feature_matching'][i] == 0:
                        continue
                    add_term('feature_matching', lw['feature_matching'][i], a, b)

    if lw['equivariance_value'] + lw['equivariance_jacobian'] != 0:
        transform = TransformJax(B, transform_key, **CONFIG['transform_params'])
        transformed_frame = transform.transform_frame(driving_frame)
        transformed_landmark = transform.inverse_warp_coordinates(
            x['driving_landmark'][:, -1])
        transformed_kp = kp_extractor(params, transformed_frame)
        generated['transformed_frame'] = transformed_frame
        generated['transformed_kp'] = transformed_kp
        generated['transformed_landmark'] = transformed_landmark

        warped_kp, transform_jac = transform.warp_coordinates(
            transformed_kp['value'], with_jac=True)

        if lw['equivariance_value'] != 0:
            add_term('equivariance_value', lw['equivariance_value'],
                     kp_driving['value'], warped_kp)
        if lw['equivariance_jacobian'] != 0:
            # TODO(synk): Transform.jacobian (torch autograd) replaced by the
            # analytic jacobian of the same warp (values identical).
            jac_trans = jnp.einsum('bkij,bkjl->bkil', transform_jac,
                                   transformed_kp['jacobian'])
            value_m = jnp.einsum('bkij,bkjl->bkil',
                                 _inv2x2(kp_driving['jacobian']), jac_trans)
            eye = jnp.broadcast_to(jnp.eye(2, dtype=jnp.float32), value_m.shape)
            add_term('equivariance_jacobian', lw['equivariance_jacobian'],
                     eye, value_m)

    loss_values = {}
    if terms:
        means = fused_loss_means(terms)
        for idx, (name, coeff) in enumerate(meta):
            loss_values[name] = loss_values.get(name, 0.0) + coeff * means[idx]

    return loss_values, generated


# -----------------------------------------------------------------------------
if __name__ == "__main__":
    key = jax.random.PRNGKey(0)
    k_param, k_data, k_transform = jax.random.split(key, 3)
    params = init_params(k_param)

    kd = jax.random.split(k_data, 6)
    B, T = 2, 16
    x = {
        'driving': jax.random.uniform(kd[0], (B, T, C_IMG, H_IMG, W_IMG),
                                      jnp.float32),
        'driving_landmark': jax.random.uniform(kd[1], (B, T, K_KP, 2),
                                               jnp.float32,
                                               minval=-1.0, maxval=1.0),
        'example_landmark': 0.1 * jax.random.normal(kd[2], (1, 16), jnp.float32),
        'driving_audio': jax.random.normal(kd[3], (T, 28, 12), jnp.float32),
        'driving_pose': jax.random.normal(kd[4], (T, 6), jnp.float32),
        'source': jax.random.uniform(kd[5], (B, C_IMG, H_IMG, W_IMG),
                                     jnp.float32),
    }

    fwd = jax.jit(generator_full_model_forward)
    loss_values, generated = fwd(params, x, k_transform)

    for leaf in jax.tree_util.tree_leaves((loss_values, generated)):
        jax.block_until_ready(leaf)

    print("KERNEL_OK")
</pallas_src>

<mosaic_0001>
module attributes {stable_mosaic.version = 11 : i64} {
  func.func private @main(%arg0: i32) attributes {dimension_semantics = [#tpu.dimension_semantics<core_parallel>], iteration_bounds = array<i64: 2>, tpu.core_type = #tpu.core_type<sc_scalar_subcore>, window_params = []} {
    return
  }
}

module attributes {stable_mosaic.version = 11 : i64} {
  func.func private @main(%arg0: i32) attributes {dimension_semantics = [#tpu.dimension_semantics<core_parallel>], iteration_bounds = array<i64: 2>, tpu.core_type = #tpu.core_type<sc_scalar_subcore>, window_params = []} {
    return
  }
}

module attributes {stable_mosaic.version = 11 : i64} {
  func.func @kern(%arg0: i32, %arg1: memref<12xf32, #tpu.memory_space<smem>>, %arg2: memref<2x128xf32, #tpu.memory_space<vmem>>, %arg3: memref<2x128xf32, #tpu.memory_space<vmem>>, %arg4: memref<4x25xf32, #tpu.memory_space<vmem>>, %arg5: memref<4x128xf32, #tpu.memory_space<vmem>>) attributes {dimension_semantics = [#tpu.dimension_semantics<parallel>], iteration_bounds = array<i64: 2>, scalar_prefetch = 0 : i64, scratch_operands = 0 : i64, tpu.core_type = #tpu.core_type<tc>, window_params = [{transform_indices = @transform_0, window_bounds = array<i64: 12>}, {transform_indices = @transform_1, window_bounds = array<i64: 2, 128>}, {transform_indices = @transform_2, window_bounds = array<i64: 2, 128>}, {pipeline_mode = #tpu.pipeline_mode<synchronous>, transform_indices = @transform_3, window_bounds = array<i64: 4, 25>}, {transform_indices = @transform_4, window_bounds = array<i64: 4, 128>}]} {
    %c0 = arith.constant 0 : index
    %c0_0 = arith.constant 0 : index
    %0 = vector.load %arg2[%c0, %c0_0] : memref<2x128xf32, #tpu.memory_space<vmem>>, vector<2x128xf32>
    %c0_1 = arith.constant 0 : index
    %c0_2 = arith.constant 0 : index
    %1 = vector.load %arg3[%c0_1, %c0_2] : memref<2x128xf32, #tpu.memory_space<vmem>>, vector<2x128xf32>
    %c0_3 = arith.constant 0 : index
    %c0_4 = arith.constant 0 : index
    %2 = vector.load %arg4[%c0_3, %c0_4] : memref<4x25xf32, #tpu.memory_space<vmem>>, vector<4x25xf32>
    %3 = vector.extract_strided_slice %2 {offsets = [0, 0], sizes = [2, 25], strides = [1, 1]} : vector<4x25xf32> to vector<2x25xf32>
    %4 = vector.extract_strided_slice %2 {offsets = [2, 0], sizes = [1, 25], strides = [1, 1]} : vector<4x25xf32> to vector<1x25xf32>
    %5 = vector.extract_strided_slice %2 {offsets = [3, 0], sizes = [1, 25], strides = [1, 1]} : vector<4x25xf32> to vector<1x25xf32>
    %6 = vector.shape_cast %0 : vector<2x128xf32> to vector<2x1x128xf32>
    %7 = vector.shape_cast %4 : vector<1x25xf32> to vector<1x25x1xf32>
    %8 = vector.broadcast %6 : vector<2x1x128xf32> to vector<2x25x128xf32>
    %9 = vector.broadcast %7 : vector<1x25x1xf32> to vector<2x25x128xf32>
    %10 = arith.subf %8, %9 : vector<2x25x128xf32>
    %11 = vector.shape_cast %1 : vector<2x128xf32> to vector<2x1x128xf32>
    %12 = vector.shape_cast %5 : vector<1x25xf32> to vector<1x25x1xf32>
    %13 = vector.broadcast %11 : vector<2x1x128xf32> to vector<2x25x128xf32>
    %14 = vector.broadcast %12 : vector<1x25x1xf32> to vector<2x25x128xf32>
    %15 = arith.subf %13, %14 : vector<2x25x128xf32>
    %16 = math.absf %10 : vector<2x25x128xf32>
    %17 = math.absf %15 : vector<2x25x128xf32>
    %18 = arith.addf %16, %17 : vector<2x25x128xf32>
    %19 = vector.shape_cast %3 : vector<2x25xf32> to vector<2x25x1xf32>
    %20 = arith.mulf %18, %18 : vector<2x25x128xf32>
    %21 = vector.broadcast %19 : vector<2x25x1xf32> to vector<2x25x128xf32>
    %22 = arith.mulf %21, %20 : vector<2x25x128xf32>
    %cst = arith.constant 9.99999997E-7 : f32
    %23 = vector.broadcast %cst : f32 to vector<2x25x128xf32>
    %24 = arith.addf %18, %23 : vector<2x25x128xf32>
    %25 = math.log %24 : vector<2x25x128xf32>
    %26 = arith.mulf %22, %25 : vector<2x25x128xf32>
    %cst_5 = arith.constant dense<0.000000e+00> : vector<2x128xf32>
    %27 = vector.multi_reduction <add>, %26, %cst_5 [1] : vector<2x25x128xf32> to vector<2x128xf32>
    %c0_6 = arith.constant 0 : index
    %28 = memref.load %arg1[%c0_6] : memref<12xf32, #tpu.memory_space<smem>>
    %c1 = arith.constant 1 : index
    %29 = memref.load %arg1[%c1] : memref<12xf32, #tpu.memory_space<smem>>
    %c2 = arith.constant 2 : index
    %30 = memref.load %arg1[%c2] : memref<12xf32, #tpu.memory_space<smem>>
    %c3 = arith.constant 3 : index
    %31 = memref.load %arg1[%c3] : memref<12xf32, #tpu.memory_space<smem>>
    %c4 = arith.constant 4 : index
    %32 = memref.load %arg1[%c4] : memref<12xf32, #tpu.memory_space<smem>>
    %c5 = arith.constant 5 : index
    %33 = memref.load %arg1[%c5] : memref<12xf32, #tpu.memory_space<smem>>
    %34 = vector.extract_strided_slice %0 {offsets = [0, 0], sizes = [1, 128], strides = [1, 1]} : vector<2x128xf32> to vector<1x128xf32>
    %35 = vector.broadcast %28 : f32 to vector<1x128xf32>
    %36 = arith.mulf %35, %34 : vector<1x128xf32>
    %37 = vector.extract_strided_slice %1 {offsets = [0, 0], sizes = [1, 128], strides = [1, 1]} : vector<2x128xf32> to vector<1x128xf32>
    %38 = vector.broadcast %29 : f32 to vector<1x128xf32>
    %39 = arith.mulf %38, %37 : vector<1x128xf32>
    %40 = arith.addf %36, %39 : vector<1x128xf32>
    %41 = vector.broadcast %30 : f32 to vector<1x128xf32>
    %42 = arith.addf %40, %41 : vector<1x128xf32>
    %43 = vector.extract_strided_slice %27 {offsets = [0, 0], sizes = [1, 128], strides = [1, 1]} : vector<2x128xf32> to vector<1x128xf32>
    %44 = arith.addf %42, %43 : vector<1x128xf32>
    %45 = vector.extract_strided_slice %0 {offsets = [0, 0], sizes = [1, 128], strides = [1, 1]} : vector<2x128xf32> to vector<1x128xf32>
    %46 = vector.broadcast %31 : f32 to vector<1x128xf32>
    %47 = arith.mulf %46, %45 : vector<1x128xf32>
    %48 = vector.extract_strided_slice %1 {offsets = [0, 0], sizes = [1, 128], strides = [1, 1]} : vector<2x128xf32> to vector<1x128xf32>
    %49 = vector.broadcast %32 : f32 to vector<1x128xf32>
    %50 = arith.mulf %49, %48 : vector<1x128xf32>
    %51 = arith.addf %47, %50 : vector<1x128xf32>
    %52 = vector.broadcast %33 : f32 to vector<1x128xf32>
    %53 = arith.addf %51, %52 : vector<1x128xf32>
    %54 = vector.extract_strided_slice %27 {offsets = [0, 0], sizes = [1, 128], strides = [1, 1]} : vector<2x128xf32> to vector<1x128xf32>
    %55 = arith.addf %53, %54 : vector<1x128xf32>
    %c6 = arith.constant 6 : index
    %56 = memref.load %arg1[%c6] : memref<12xf32, #tpu.memory_space<smem>>
    %c7 = arith.constant 7 : index
    %57 = memref.load %arg1[%c7] : memref<12xf32, #tpu.memory_space<smem>>
    %c8 = arith.constant 8 : index
    %58 = memref.load %arg1[%c8] : memref<12xf32, #tpu.memory_space<smem>>
    %c9 = arith.constant 9 : index
    %59 = memref.load %arg1[%c9] : memref<12xf32, #tpu.memory_space<smem>>
    %c10 = arith.constant 10 : index
    %60 = memref.load %arg1[%c10] : memref<12xf32, #tpu.memory_space<smem>>
    %c11 = arith.constant 11 : index
    %61 = memref.load %arg1[%c11] : memref<12xf32, #tpu.memory_space<smem>>
    %62 = vector.extract_strided_slice %0 {offsets = [1, 0], sizes = [1, 128], strides = [1, 1]} : vector<2x128xf32> to vector<1x128xf32>
    %63 = vector.broadcast %56 : f32 to vector<1x128xf32>
    %64 = arith.mulf %63, %62 : vector<1x128xf32>
    %65 = vector.extract_strided_slice %1 {offsets = [1, 0], sizes = [1, 128], strides = [1, 1]} : vector<2x128xf32> to vector<1x128xf32>
    %66 = vector.broadcast %57 : f32 to vector<1x128xf32>
    %67 = arith.mulf %66, %65 : vector<1x128xf32>
    %68 = arith.addf %64, %67 : vector<1x128xf32>
    %69 = vector.broadcast %58 : f32 to vector<1x128xf32>
    %70 = arith.addf %68, %69 : vector<1x128xf32>
    %71 = vector.extract_strided_slice %27 {offsets = [1, 0], sizes = [1, 128], strides = [1, 1]} : vector<2x128xf32> to vector<1x128xf32>
    %72 = arith.addf %70, %71 : vector<1x128xf32>
    %73 = vector.extract_strided_slice %0 {offsets = [1, 0], sizes = [1, 128], strides = [1, 1]} : vector<2x128xf32> to vector<1x128xf32>
    %74 = vector.broadcast %59 : f32 to vector<1x128xf32>
    %75 = arith.mulf %74, %73 : vector<1x128xf32>
    %76 = vector.extract_strided_slice %1 {offsets = [1, 0], sizes = [1, 128], strides = [1, 1]} : vector<2x128xf32> to vector<1x128xf32>
    %77 = vector.broadcast %60 : f32 to vector<1x128xf32>
    %78 = arith.mulf %77, %76 : vector<1x128xf32>
    %79 = arith.addf %75, %78 : vector<1x128xf32>
    %80 = vector.broadcast %61 : f32 to vector<1x128xf32>
    %81 = arith.addf %79, %80 : vector<1x128xf32>
    %82 = vector.extract_strided_slice %27 {offsets = [1, 0], sizes = [1, 128], strides = [1, 1]} : vector<2x128xf32> to vector<1x128xf32>
    %83 = arith.addf %81, %82 : vector<1x128xf32>
    %84 = tpu.concatenate %44, %55, %72, %83 in 0 : vector<1x128xf32>, vector<1x128xf32>, vector<1x128xf32>, vector<1x128xf32> -> vector<4x128xf32>
    %c0_7 = arith.constant 0 : index
    %c0_8 = arith.constant 0 : index
    %85 = vector.load %arg5[%c0_7, %c0_8] : memref<4x128xf32, #tpu.memory_space<vmem>>, vector<4x128xf32>
    tpu.vector_store %arg5[%c0_7, %c0_8], %84 {strides = array<i32>} : memref<4x128xf32, #tpu.memory_space<vmem>>, vector<4x128xf32>,
    return
  }
  func.func @transform_0(%arg0: i32) -> i32 {
    %c0_i32 = arith.constant 0 : i32
    %c0_i32_0 = arith.constant 0 : i32
    return %c0_i32 : i32
  }
  func.func @transform_1(%arg0: i32) -> (i32, i32) {
    %c0_i32 = arith.constant 0 : i32
    %c0_i32_0 = arith.constant 0 : i32
    return %c0_i32, %arg0 : i32, i32
  }
  func.func @transform_2(%arg0: i32) -> (i32, i32) {
    %c0_i32 = arith.constant 0 : i32
    %c0_i32_0 = arith.constant 0 : i32
    return %c0_i32, %arg0 : i32, i32
  }
  func.func @transform_3(%arg0: i32) -> (i32, i32) {
    %c0_i32 = arith.constant 0 : i32
    %c0_i32_0 = arith.constant 0 : i32
    %c0_i32_1 = arith.constant 0 : i32
    return %c0_i32, %c0_i32_0 : i32, i32
  }
  func.func @transform_4(%arg0: i32) -> (i32, i32) {
    %c0_i32 = arith.constant 0 : i32
    %c0_i32_0 = arith.constant 0 : i32
    return %c0_i32, %arg0 : i32, i32
  }
}

module attributes {stable_mosaic.version = 11 : i64} {
  func.func @_blur_mm_kernel(%arg0: i32, %arg1: memref<1x20x20xf32, #tpu.memory_space<vmem>>, %arg2: memref<8x20xf32, #tpu.memory_space<vmem>>, %arg3: memref<20x128xf32, #tpu.memory_space<vmem>>, %arg4: memref<1x8x128xf32, #tpu.memory_space<vmem>>) attributes {dimension_semantics = [#tpu.dimension_semantics<parallel>], iteration_bounds = array<i64: 12>, scalar_prefetch = 0 : i64, scratch_operands = 0 : i64, tpu.core_type = #tpu.core_type<tc>, window_params = [{transform_indices = @transform_0, window_bounds = array<i64: 1, 20, 20>}, {pipeline_mode = #tpu.pipeline_mode<synchronous>, transform_indices = @transform_1, window_bounds = array<i64: 8, 20>}, {pipeline_mode = #tpu.pipeline_mode<synchronous>, transform_indices = @transform_2, window_bounds = array<i64: 20, 128>}, {transform_indices = @transform_3, window_bounds = array<i64: 1, 8, 128>}]} {
    %c0 = arith.constant 0 : index
    %c0_0 = arith.constant 0 : index
    %c0_1 = arith.constant 0 : index
    %0 = vector.load %arg1[%c0, %c0_0, %c0_1] : memref<1x20x20xf32, #tpu.memory_space<vmem>>, vector<1x20x20xf32>
    %1 = vector.shape_cast %0 : vector<1x20x20xf32> to vector<20x20xf32>
    %c0_2 = arith.constant 0 : index
    %c0_3 = arith.constant 0 : index
    %2 = vector.load %arg2[%c0_2, %c0_3] : memref<8x20xf32, #tpu.memory_space<vmem>>, vector<8x20xf32>
    %cst = arith.constant dense<0.000000e+00> : vector<8x20xf32>
    %3 = tpu.matmul %2, %1, %cst {dimension_numbers = #tpu.dot_dimension_numbers<[1], [0], [0], [1], [0, 0, 1, 1], [], []>} : vector<8x20xf32>, vector<20x20xf32>, vector<8x20xf32> -> vector<8x20xf32>
    %c0_4 = arith.constant 0 : index
    %c0_5 = arith.constant 0 : index
    %4 = vector.load %arg3[%c0_4, %c0_5] : memref<20x128xf32, #tpu.memory_space<vmem>>, vector<20x128xf32>
    %cst_6 = arith.constant dense<0.000000e+00> : vector<8x128xf32>
    %5 = tpu.matmul %3, %4, %cst_6 {dimension_numbers = #tpu.dot_dimension_numbers<[1], [0], [0], [1], [0, 0, 1, 1], [], []>} : vector<8x20xf32>, vector<20x128xf32>, vector<8x128xf32> -> vector<8x128xf32>
    %c0_7 = arith.constant 0 : index
    %c0_8 = arith.constant 0 : index
    %c0_9 = arith.constant 0 : index
    %6 = vector.load %arg4[%c0_7, %c0_8, %c0_9] : memref<1x8x128xf32, #tpu.memory_space<vmem>>, vector<1x8x128xf32>
    %7 = vector.shape_cast %6 : vector<1x8x128xf32> to vector<8x128xf32>
    %8 = vector.shape_cast %5 : vector<8x128xf32> to vector<1x8x128xf32>
    tpu.vector_store %arg4[%c0_7, %c0_8, %c0_9], %8 {strides = array<i32>} : memref<1x8x128xf32, #tpu.memory_space<vmem>>, vector<1x8x128xf32>,
    return
  }
  func.func @transform_0(%arg0: i32) -> (i32, i32, i32) {
    %c0_i32 = arith.constant 0 : i32
    %c0_i32_0 = arith.constant 0 : i32
    %c0_i32_1 = arith.constant 0 : i32
    return %arg0, %c0_i32, %c0_i32_0 : i32, i32, i32
  }
  func.func @transform_1(%arg0: i32) -> (i32, i32) {
    %c0_i32 = arith.constant 0 : i32
    %c0_i32_0 = arith.constant 0 : i32
    %c0_i32_1 = arith.constant 0 : i32
    return %c0_i32, %c0_i32_0 : i32, i32
  }
  func.func @transform_2(%arg0: i32) -> (i32, i32) {
    %c0_i32 = arith.constant 0 : i32
    %c0_i32_0 = arith.constant 0 : i32
    %c0_i32_1 = arith.constant 0 : i32
    return %c0_i32, %c0_i32_0 : i32, i32
  }
  func.func @transform_3(%arg0: i32) -> (i32, i32, i32) {
    %c0_i32 = arith.constant 0 : i32
    %c0_i32_0 = arith.constant 0 : i32
    %c0_i32_1 = arith.constant 0 : i32
    return %arg0, %c0_i32, %c0_i32_0 : i32, i32, i32
  }
}

module attributes {stable_mosaic.version = 11 : i64} {
  func.func @_loss_seg_kernel(%arg0: i32, %arg1: memref<23xi32, #tpu.memory_space<smem>>, %arg2: memref<23xi32, #tpu.memory_space<smem>>, %arg3: memref<23xi32, #tpu.memory_space<smem>>, %arg4: memref<32x128xf32, #tpu.memory_space<vmem>>, %arg5: memref<32x128xf32, #tpu.memory_space<vmem>>, %arg6: memref<1x1x1xf32, #tpu.memory_space<vmem>>) attributes {dimension_semantics = [#tpu.dimension_semantics<arbitrary>], iteration_bounds = array<i64: 23>, scalar_prefetch = 3 : i64, scratch_operands = 0 : i64, tpu.core_type = #tpu.core_type<tc>, window_params = [{transform_indices = @transform_0, window_bounds = array<i64: 32, 128>}, {transform_indices = @transform_1, window_bounds = array<i64: 32, 128>}, {transform_indices = @transform_2, window_bounds = array<i64: 1, 1, 1>}]} {
    %c0 = arith.constant 0 : index
    %c0_0 = arith.constant 0 : index
    %0 = vector.load %arg4[%c0, %c0_0] : memref<32x128xf32, #tpu.memory_space<vmem>>, vector<32x128xf32>
    %c0_1 = arith.constant 0 : index
    %c0_2 = arith.constant 0 : index
    %1 = vector.load %arg5[%c0_1, %c0_2] : memref<32x128xf32, #tpu.memory_space<vmem>>, vector<32x128xf32>
    %2 = arith.subf %0, %1 : vector<32x128xf32>
    %3 = arith.index_cast %arg0 : i32 to index
    %4 = memref.load %arg2[%3] : memref<23xi32, #tpu.memory_space<smem>>
    %c1_i32 = arith.constant 1 : i32
    %5 = arith.cmpi eq, %4, %c1_i32 : i32
    %6 = arith.extui %5 : i1 to i32
    %c0_i32 = arith.constant 0 : i32
    %7 = arith.cmpi ne, %6, %c0_i32 : i32
    scf.if %7 {
      %cst = arith.constant 0.000000e+00 : f32
      %18 = vector.broadcast %cst : f32 to vector<1x1x1xf32>
      %c0_7 = arith.constant 0 : index
      %c0_8 = arith.constant 0 : index
      %c0_9 = arith.constant 0 : index
      %19 = vector.load %arg6[%c0_7, %c0_8, %c0_9] : memref<1x1x1xf32, #tpu.memory_space<vmem>>, vector<1x1x1xf32>
      tpu.vector_store %arg6[%c0_7, %c0_8, %c0_9], %18 {strides = array<i32>} : memref<1x1x1xf32, #tpu.memory_space<vmem>>, vector<1x1x1xf32>,
    } else {
    }
    %8 = arith.index_cast %arg0 : i32 to index
    %9 = memref.load %arg3[%8] : memref<23xi32, #tpu.memory_space<smem>>
    %c1_i32_3 = arith.constant 1 : i32
    %10 = arith.cmpi eq, %9, %c1_i32_3 : i32
    %11 = arith.extui %10 : i1 to i32
    %c0_i32_4 = arith.constant 0 : i32
    %12 = arith.cmpi ne, %11, %c0_i32_4 : i32
    scf.if %12 {
      %c0_7 = arith.constant 0 : index
      %c0_8 = arith.constant 0 : index
      %c0_9 = arith.constant 0 : index
      %18 = vector.load %arg6[%c0_7, %c0_8, %c0_9] : memref<1x1x1xf32, #tpu.memory_space<vmem>>, vector<1x1x1xf32>
      %19 = arith.mulf %2, %2 : vector<32x128xf32>
      %20 = vector.shape_cast %19 : vector<32x128xf32> to vector<1x32x128xf32>
      %cst = arith.constant dense<0.000000e+00> : vector<1xf32>
      %21 = vector.multi_reduction <add>, %20, %cst [1, 2] : vector<1x32x128xf32> to vector<1xf32>
      %22 = vector.shape_cast %21 : vector<1xf32> to vector<1x1x1xf32>
      %23 = vector.extract %22[0, 0, 0] : f32 from vector<1x1x1xf32>
      %24 = vector.broadcast %23 : f32 to vector<1x1x1xf32>
      %25 = arith.addf %18, %24 : vector<1x1x1xf32>
      %c0_10 = arith.constant 0 : index
      %c0_11 = arith.constant 0 : index
      %c0_12 = arith.constant 0 : index
      %26 = vector.load %arg6[%c0_10, %c0_11, %c0_12] : memref<1x1x1xf32, #tpu.memory_space<vmem>>, vector<1x1x1xf32>
      tpu.vector_store %arg6[%c0_10, %c0_11, %c0_12], %25 {strides = array<i32>} : memref<1x1x1xf32, #tpu.memory_space<vmem>>, vector<1x1x1xf32>,
    } else {
    }
    %13 = arith.index_cast %arg0 : i32 to index
    %14 = memref.load %arg3[%13] : memref<23xi32, #tpu.memory_space<smem>>
    %c0_i32_5 = arith.constant 0 : i32
    %15 = arith.cmpi eq, %14, %c0_i32_5 : i32
    %16 = arith.extui %15 : i1 to i32
    %c0_i32_6 = arith.constant 0 : i32
    %17 = arith.cmpi ne, %16, %c0_i32_6 : i32
    scf.if %17 {
      %c0_7 = arith.constant 0 : index
      %c0_8 = arith.constant 0 : index
      %c0_9 = arith.constant 0 : index
      %18 = vector.load %arg6[%c0_7, %c0_8, %c0_9] : memref<1x1x1xf32, #tpu.memory_space<vmem>>, vector<1x1x1xf32>
      %19 = math.absf %2 : vector<32x128xf32>
      %20 = vector.shape_cast %19 : vector<32x128xf32> to vector<1x32x128xf32>
      %cst = arith.constant dense<0.000000e+00> : vector<1xf32>
      %21 = vector.multi_reduction <add>, %20, %cst [1, 2] : vector<1x32x128xf32> to vector<1xf32>
      %22 = vector.shape_cast %21 : vector<1xf32> to vector<1x1x1xf32>
      %23 = vector.extract %22[0, 0, 0] : f32 from vector<1x1x1xf32>
      %24 = vector.broadcast %23 : f32 to vector<1x1x1xf32>
      %25 = arith.addf %18, %24 : vector<1x1x1xf32>
      %c0_10 = arith.constant 0 : index
      %c0_11 = arith.constant 0 : index
      %c0_12 = arith.constant 0 : index
      %26 = vector.load %arg6[%c0_10, %c0_11, %c0_12] : memref<1x1x1xf32, #tpu.memory_space<vmem>>, vector<1x1x1xf32>
      tpu.vector_store %arg6[%c0_10, %c0_11, %c0_12], %25 {strides = array<i32>} : memref<1x1x1xf32, #tpu.memory_space<vmem>>, vector<1x1x1xf32>,
    } else {
    }
    return
  }
  func.func @transform_0(%arg0: i32, %arg1: memref<23xi32, #tpu.memory_space<smem>>, %arg2: memref<23xi32, #tpu.memory_space<smem>>, %arg3: memref<23xi32, #tpu.memory_space<smem>>) -> (i32, i32) {
    %c0_i32 = arith.constant 0 : i32
    %c0_i32_0 = arith.constant 0 : i32
    return %arg0, %c0_i32 : i32, i32
  }
  func.func @transform_1(%arg0: i32, %arg1: memref<23xi32, #tpu.memory_space<smem>>, %arg2: memref<23xi32, #tpu.memory_space<smem>>, %arg3: memref<23xi32, #tpu.memory_space<smem>>) -> (i32, i32) {
    %c0_i32 = arith.constant 0 : i32
    %c0_i32_0 = arith.constant 0 : i32
    return %arg0, %c0_i32 : i32, i32
  }
  func.func @transform_2(%arg0: i32, %arg1: memref<23xi32, #tpu.memory_space<smem>>, %arg2: memref<23xi32, #tpu.memory_space<smem>>, %arg3: memref<23xi32, #tpu.memory_space<smem>>) -> (i32, i32, i32) {
    %0 = arith.index_cast %arg0 : i32 to index
    %1 = memref.load %arg1[%0] : memref<23xi32, #tpu.memory_space<smem>>
    %c0_i32 = arith.constant 0 : i32
    %c0_i32_0 = arith.constant 0 : i32
    %c0_i32_1 = arith.constant 0 : i32
    return %1, %c0_i32, %c0_i32_0 : i32, i32, i32
  }
}

</mosaic_0001>

<bundles_post_ra>
// kernel: squeeze.63
= control target key start
LH: loop header
LB: loop body
LE: loop exit
PB: predicated region body
PF: predicated region fallthrough
CT: control target
= control target key end

     0   :  { %vm3_vm0 = vcmask 31744   ;;  %s1215_s12 = smov 124   ;;  %s1217_s2 = smov 116   ;;  %s1681_s0 = inlined_call_operand.vmem [shape: f32[2,1,3,16,16], index: 0, kind: input, shape index: {}]   ;;  %s1682_s1 = inlined_call_operand.vmem [shape: f32[2,3,4,4,4,4], index: 1, kind: output, shape index: {}]  }
   0x1   :  { %v1231_v0 = vld [vmem:[%s1681_s0 + $0x10] sm:$0xff]   ;;  %v1236_v1 = vld [vmem:[%s1681_s0] sm:$0xff]   ;;  %v1241_v2 = vld [vmem:[%s1681_s0 + $0x18] sm:$0xff]  }
   0x2   :  { %102 = vrot.lane.b32.xlu1 %v1231_v0, %s1215_s12  ;;  %84 = vrot.lane.b32.xlu0 %v1236_v1, %s1215_s12  ;;  %v1084_v3 = vld [vmem:[%s1681_s0 + $0x8] sm:$0xff]   ;;  %5 = vst.msk [vmem:[#allocation0] ss:$8 sm:$0xf0] %vm3_vm0, %v1236_v1   ;;  %v1087_v5 = vld [vmem:[%s1681_s0 + $0x20] sm:$0xff]  }
   0x3   :  { %v1088_v4 = vld [vmem:[%s1681_s0 + $0x28] sm:$0xff]   ;;  %4 = vst.msk [vmem:[#allocation0] ss:$8 sm:$0xf] %vm3_vm0, %v1236_v1   ;;  %v1090_v6 = vld [vmem:[%s1681_s0 + $0x38] sm:$0xff]   ;;  %v1089_v7 = vld [vmem:[%s1681_s0 + $0x30] sm:$0xff]  }
   0x4   :  { %24 = vst.msk [vmem:[#allocation0 + $0xc0] ss:$8 sm:$0xf] %vm3_vm0, %v1241_v2   ;;  %26 = vst.msk [vmem:[#allocation0 + $0xc0] ss:$8 sm:$0xf0] %vm3_vm0, %v1241_v2  }
   0x5   :  { %17 = vst.msk [vmem:[#allocation0 + $0x80] ss:$8 sm:$0xf] %vm3_vm0, %v1231_v0   ;;  %19 = vst.msk [vmem:[#allocation0 + $0x80] ss:$8 sm:$0xf0] %vm3_vm0, %v1231_v0  }
   0x6   :  { %10 = vst.msk [vmem:[#allocation0 + $0x40] ss:$8 sm:$0xf] %vm3_vm0, %v1084_v3   ;;  %12 = vst.msk [vmem:[#allocation0 + $0x40] ss:$8 sm:$0xf0] %vm3_vm0, %v1084_v3   ;;  %111 = vrot.lane.b32.xlu1 %v1241_v2, %s1215_s12  ;;  %93 = vrot.lane.b32.xlu0 %v1084_v3, %s1215_s12 }
   0x7   :  { %38 = vst.msk [vmem:[#allocation0 + $0x140] ss:$8 sm:$0xf] %vm3_vm0, %v1088_v4   ;;  %40 = vst.msk [vmem:[#allocation0 + $0x140] ss:$8 sm:$0xf0] %vm3_vm0, %v1088_v4  }
   0x8   :  { %v1092_v8 = vld [vmem:[%s1681_s0 + $0x48] sm:$0xff]   ;;  %v1091_v9 = vld [vmem:[%s1681_s0 + $0x40] sm:$0xff]   ;;  %v1094_v10 = vld [vmem:[%s1681_s0 + $0x58] sm:$0xff]   ;;  %31 = vst.msk [vmem:[#allocation0 + $0x100] ss:$8 sm:$0xf] %vm3_vm0, %v1087_v5  }
   0x9   :  { %33 = vst.msk [vmem:[#allocation0 + $0x100] ss:$8 sm:$0xf0] %vm3_vm0, %v1087_v5   ;;  %52 = vst.msk [vmem:[#allocation0 + $0x1c0] ss:$8 sm:$0xf] %vm3_vm0, %v1090_v6  }
   0xa   :  { %54 = vst.msk [vmem:[#allocation0 + $0x1c0] ss:$8 sm:$0xf0] %vm3_vm0, %v1090_v6   ;;  %45 = vst.msk [vmem:[#allocation0 + $0x180] ss:$8 sm:$0xf] %vm3_vm0, %v1089_v7   ;;  %129 = vrot.lane.b32.xlu1 %v1088_v4, %s1215_s12  ;;  %120 = vrot.lane.b32.xlu0 %v1087_v5, %s1215_s12 }
   0xb   :  { %47 = vst.msk [vmem:[#allocation0 + $0x180] ss:$8 sm:$0xf0] %vm3_vm0, %v1089_v7   ;;  %v1093_v11 = vld [vmem:[%s1681_s0 + $0x50] sm:$0xff]   ;;  %s1216_s0 = smov 120  }
   0xc   :  { %61 = vst.msk [vmem:[#allocation0 + $0x200] ss:$8 sm:$0xf0] %vm3_vm0, %v1091_v9   ;;  %59 = vst.msk [vmem:[#allocation0 + $0x200] ss:$8 sm:$0xf] %vm3_vm0, %v1091_v9  }
   0xd   :  { %66 = vst.msk [vmem:[#allocation0 + $0x240] ss:$8 sm:$0xf] %vm3_vm0, %v1092_v8   ;;  %68 = vst.msk [vmem:[#allocation0 + $0x240] ss:$8 sm:$0xf0] %vm3_vm0, %v1092_v8  }
   0xe   :  { %80 = vst.msk [vmem:[#allocation0 + $0x2c0] ss:$8 sm:$0xf] %vm3_vm0, %v1094_v10   ;;  %82 = vst.msk [vmem:[#allocation0 + $0x2c0] ss:$8 sm:$0xf0] %vm3_vm0, %v1094_v10   ;;  %147 = vrot.lane.b32.xlu1 %v1090_v6, %s1215_s12  ;;  %138 = vrot.lane.b32.xlu0 %v1089_v7, %s1215_s12 }
   0xf   :  { %73 = vst.msk [vmem:[#allocation0 + $0x280] ss:$8 sm:$0xf] %vm3_vm0, %v1093_v11   ;;  %75 = vst.msk [vmem:[#allocation0 + $0x280] ss:$8 sm:$0xf0] %vm3_vm0, %v1093_v11  }
  0x12   :  { %165 = vrot.lane.b32.xlu1 %v1092_v8, %s1215_s12  ;;  %156 = vrot.lane.b32.xlu0 %v1091_v9, %s1215_s12 }
  0x16   :  { %183 = vrot.lane.b32.xlu1 %v1094_v10, %s1215_s12  ;;  %174 = vrot.lane.b32.xlu0 %v1093_v11, %s1215_s12 }
  0x1a   :  { %200 = vrot.lane.b32.xlu1 %v1084_v3, %s1216_s0  ;;  %191 = vrot.lane.b32.xlu0 %v1236_v1, %s1216_s0 }
  0x1e   :  { %218 = vrot.lane.b32.xlu1 %v1241_v2, %s1216_s0  ;;  %209 = vrot.lane.b32.xlu0 %v1231_v0, %s1216_s0 }
  0x22   :  { %236 = vrot.lane.b32.xlu1 %v1088_v4, %s1216_s0  ;;  %227 = vrot.lane.b32.xlu0 %v1087_v5, %s1216_s0 }
  0x26   :  { %254 = vrot.lane.b32.xlu1 %v1090_v6, %s1216_s0  ;;  %245 = vrot.lane.b32.xlu0 %v1089_v7, %s1216_s0 }
  0x2a   :  { %272 = vrot.lane.b32.xlu1 %v1092_v8, %s1216_s0  ;;  %263 = vrot.lane.b32.xlu0 %v1091_v9, %s1216_s0 }
  0x2e   :  { %290 = vrot.lane.b32.xlu1 %v1094_v10, %s1216_s0  ;;  %281 = vrot.lane.b32.xlu0 %v1093_v11, %s1216_s0 }
  0x32   :  { %307 = vrot.lane.b32.xlu1 %v1084_v3, %s1217_s2  ;;  %298 = vrot.lane.b32.xlu0 %v1236_v1, %s1217_s2 }
  0x36   :  { %325 = vrot.lane.b32.xlu1 %v1241_v2, %s1217_s2  ;;  %316 = vrot.lane.b32.xlu0 %v1231_v0, %s1217_s2 }
  0x3a   :  { %343 = vrot.lane.b32.xlu1 %v1088_v4, %s1217_s2  ;;  %334 = vrot.lane.b32.xlu0 %v1087_v5, %s1217_s2 }
  0x3e   :  { %361 = vrot.lane.b32.xlu1 %v1090_v6, %s1217_s2  ;;  %352 = vrot.lane.b32.xlu0 %v1089_v7, %s1217_s2 }
  0x42   :  { %379 = vrot.lane.b32.xlu1 %v1092_v8, %s1217_s2  ;;  %370 = vrot.lane.b32.xlu0 %v1091_v9, %s1217_s2 }
  0x46   :  { %397 = vrot.lane.b32.xlu1 %v1094_v10, %s1217_s2  ;;  %388 = vrot.lane.b32.xlu0 %v1093_v11, %s1217_s2 }
  0x74   :  { %v103_v12 = vpop.permute.xlu1 %102   ;;  %v85_v13 = vpop.permute.xlu0 %84  }
  0x75   :  { %106 = vst.msk [vmem:[#allocation0 + $0x81] ss:$8 sm:$0xf] %vm3_vm0, %v103_v12   ;;  %108 = vst.msk [vmem:[#allocation0 + $0x81] ss:$8 sm:$0xf0] %vm3_vm0, %v103_v12  }
  0x76   :  { %88 = vst.msk [vmem:[#allocation0 + $0x1] ss:$8 sm:$0xf] %vm3_vm0, %v85_v13   ;;  %90 = vst.msk [vmem:[#allocation0 + $0x1] ss:$8 sm:$0xf0] %vm3_vm0, %v85_v13  }
  0x78   :  { %v112_v14 = vpop.permute.xlu1 %111   ;;  %v94_v15 = vpop.permute.xlu0 %93  }
  0x79   :  { %115 = vst.msk [vmem:[#allocation0 + $0xc1] ss:$8 sm:$0xf] %vm3_vm0, %v112_v14   ;;  %117 = vst.msk [vmem:[#allocation0 + $0xc1] ss:$8 sm:$0xf0] %vm3_vm0, %v112_v14  }
  0x7a   :  { %97 = vst.msk [vmem:[#allocation0 + $0x41] ss:$8 sm:$0xf] %vm3_vm0, %v94_v15   ;;  %99 = vst.msk [vmem:[#allocation0 + $0x41] ss:$8 sm:$0xf0] %vm3_vm0, %v94_v15  }
  0x7c   :  { %v130_v16 = vpop.permute.xlu1 %129   ;;  %v121_v17 = vpop.permute.xlu0 %120  }
  0x7d   :  { %133 = vst.msk [vmem:[#allocation0 + $0x141] ss:$8 sm:$0xf] %vm3_vm0, %v130_v16   ;;  %135 = vst.msk [vmem:[#allocation0 + $0x141] ss:$8 sm:$0xf0] %vm3_vm0, %v130_v16  }
  0x7e   :  { %124 = vst.msk [vmem:[#allocation0 + $0x101] ss:$8 sm:$0xf] %vm3_vm0, %v121_v17   ;;  %126 = vst.msk [vmem:[#allocation0 + $0x101] ss:$8 sm:$0xf0] %vm3_vm0, %v121_v17  }
  0x80   :  { %v148_v18 = vpop.permute.xlu1 %147   ;;  %v139_v19 = vpop.permute.xlu0 %138  }
  0x81   :  { %151 = vst.msk [vmem:[#allocation0 + $0x1c1] ss:$8 sm:$0xf] %vm3_vm0, %v148_v18   ;;  %153 = vst.msk [vmem:[#allocation0 + $0x1c1] ss:$8 sm:$0xf0] %vm3_vm0, %v148_v18  }
  0x82   :  { %142 = vst.msk [vmem:[#allocation0 + $0x181] ss:$8 sm:$0xf] %vm3_vm0, %v139_v19   ;;  %144 = vst.msk [vmem:[#allocation0 + $0x181] ss:$8 sm:$0xf0] %vm3_vm0, %v139_v19  }
  0x84   :  { %v166_v20 = vpop.permute.xlu1 %165   ;;  %v157_v21 = vpop.permute.xlu0 %156  }
  0x85   :  { %169 = vst.msk [vmem:[#allocation0 + $0x241] ss:$8 sm:$0xf] %vm3_vm0, %v166_v20   ;;  %171 = vst.msk [vmem:[#allocation0 + $0x241] ss:$8 sm:$0xf0] %vm3_vm0, %v166_v20  }
  0x86   :  { %160 = vst.msk [vmem:[#allocation0 + $0x201] ss:$8 sm:$0xf] %vm3_vm0, %v157_v21   ;;  %162 = vst.msk [vmem:[#allocation0 + $0x201] ss:$8 sm:$0xf0] %vm3_vm0, %v157_v21  }
  0x88   :  { %v184_v22 = vpop.permute.xlu1 %183   ;;  %v175_v23 = vpop.permute.xlu0 %174  }
  0x89   :  { %187 = vst.msk [vmem:[#allocation0 + $0x2c1] ss:$8 sm:$0xf] %vm3_vm0, %v184_v22   ;;  %189 = vst.msk [vmem:[#allocation0 + $0x2c1] ss:$8 sm:$0xf0] %vm3_vm0, %v184_v22  }
  0x8a   :  { %178 = vst.msk [vmem:[#allocation0 + $0x281] ss:$8 sm:$0xf] %vm3_vm0, %v175_v23   ;;  %180 = vst.msk [vmem:[#allocation0 + $0x281] ss:$8 sm:$0xf0] %vm3_vm0, %v175_v23  }
  0x8c   :  { %v201_v24 = vpop.permute.xlu1 %200   ;;  %v192_v25 = vpop.permute.xlu0 %191  }
  0x8d   :  { %204 = vst.msk [vmem:[#allocation0 + $0x42] ss:$8 sm:$0xf] %vm3_vm0, %v201_v24   ;;  %206 = vst.msk [vmem:[#allocation0 + $0x42] ss:$8 sm:$0xf0] %vm3_vm0, %v201_v24  }
  0x8e   :  { %195 = vst.msk [vmem:[#allocation0 + $0x2] ss:$8 sm:$0xf] %vm3_vm0, %v192_v25   ;;  %197 = vst.msk [vmem:[#allocation0 + $0x2] ss:$8 sm:$0xf0] %vm3_vm0, %v192_v25  }
  0x90   :  { %v219_v26 = vpop.permute.xlu1 %218   ;;  %v210_v27 = vpop.permute.xlu0 %209  }
  0x91   :  { %222 = vst.msk [vmem:[#allocation0 + $0xc2] ss:$8 sm:$0xf] %vm3_vm0, %v219_v26   ;;  %224 = vst.msk [vmem:[#allocation0 + $0xc2] ss:$8 sm:$0xf0] %vm3_vm0, %v219_v26  }
  0x92   :  { %213 = vst.msk [vmem:[#allocation0 + $0x82] ss:$8 sm:$0xf] %vm3_vm0, %v210_v27   ;;  %215 = vst.msk [vmem:[#allocation0 + $0x82] ss:$8 sm:$0xf0] %vm3_vm0, %v210_v27  }
  0x94   :  { %v237_v28 = vpop.permute.xlu1 %236   ;;  %v228_v29 = vpop.permute.xlu0 %227  }
  0x95   :  { %240 = vst.msk [vmem:[#allocation0 + $0x142] ss:$8 sm:$0xf] %vm3_vm0, %v237_v28   ;;  %242 = vst.msk [vmem:[#allocation0 + $0x142] ss:$8 sm:$0xf0] %vm3_vm0, %v237_v28  }
  0x96   :  { %231 = vst.msk [vmem:[#allocation0 + $0x102] ss:$8 sm:$0xf] %vm3_vm0, %v228_v29   ;;  %233 = vst.msk [vmem:[#allocation0 + $0x102] ss:$8 sm:$0xf0] %vm3_vm0, %v228_v29  }
  0x98   :  { %v255_v30 = vpop.permute.xlu1 %254   ;;  %v246_v31 = vpop.permute.xlu0 %245  }
  0x99   :  { %258 = vst.msk [vmem:[#allocation0 + $0x1c2] ss:$8 sm:$0xf] %vm3_vm0, %v255_v30   ;;  %260 = vst.msk [vmem:[#allocation0 + $0x1c2] ss:$8 sm:$0xf0] %vm3_vm0, %v255_v30  }
  0x9a   :  { %249 = vst.msk [vmem:[#allocation0 + $0x182] ss:$8 sm:$0xf] %vm3_vm0, %v246_v31   ;;  %251 = vst.msk [vmem:[#allocation0 + $0x182] ss:$8 sm:$0xf0] %vm3_vm0, %v246_v31  }
  0x9c   :  { %v273_v32 = vpop.permute.xlu1 %272   ;;  %v264_v33 = vpop.permute.xlu0 %263  }
  0x9d   :  { %276 = vst.msk [vmem:[#allocation0 + $0x242] ss:$8 sm:$0xf] %vm3_vm0, %v273_v32   ;;  %278 = vst.msk [vmem:[#allocation0 + $0x242] ss:$8 sm:$0xf0] %vm3_vm0, %v273_v32  }
  0x9e   :  { %267 = vst.msk [vmem:[#allocation0 + $0x202] ss:$8 sm:$0xf] %vm3_vm0, %v264_v33   ;;  %269 = vst.msk [vmem:[#allocation0 + $0x202] ss:$8 sm:$0xf0] %vm3_vm0, %v264_v33  }
  0xa0   :  { %v291_v34 = vpop.permute.xlu1 %290   ;;  %v282_v35 = vpop.permute.xlu0 %281  }
  0xa1   :  { %294 = vst.msk [vmem:[#allocation0 + $0x2c2] ss:$8 sm:$0xf] %vm3_vm0, %v291_v34   ;;  %296 = vst.msk [vmem:[#allocation0 + $0x2c2] ss:$8 sm:$0xf0] %vm3_vm0, %v291_v34  }
  0xa2   :  { %285 = vst.msk [vmem:[#allocation0 + $0x282] ss:$8 sm:$0xf] %vm3_vm0, %v282_v35   ;;  %287 = vst.msk [vmem:[#allocation0 + $0x282] ss:$8 sm:$0xf0] %vm3_vm0, %v282_v35  }
  0xa4   :  { %v308_v36 = vpop.permute.xlu1 %307   ;;  %v299_v37 = vpop.permute.xlu0 %298  }
  0xa5   :  { %311 = vst.msk [vmem:[#allocation0 + $0x43] ss:$8 sm:$0xf] %vm3_vm0, %v308_v36   ;;  %313 = vst.msk [vmem:[#allocation0 + $0x43] ss:$8 sm:$0xf0] %vm3_vm0, %v308_v36  }
  0xa6   :  { %302 = vst.msk [vmem:[#allocation0 + $0x3] ss:$8 sm:$0xf] %vm3_vm0, %v299_v37   ;;  %304 = vst.msk [vmem:[#allocation0 + $0x3] ss:$8 sm:$0xf0] %vm3_vm0, %v299_v37  }
  0xa8   :  { %v326_v38 = vpop.permute.xlu1 %325   ;;  %v317_v39 = vpop.permute.xlu0 %316  }
  0xa9   :  { %329 = vst.msk [vmem:[#allocation0 + $0xc3] ss:$8 sm:$0xf] %vm3_vm0, %v326_v38   ;;  %331 = vst.msk [vmem:[#allocation0 + $0xc3] ss:$8 sm:$0xf0] %vm3_vm0, %v326_v38  }
  0xaa   :  { %320 = vst.msk [vmem:[#allocation0 + $0x83] ss:$8 sm:$0xf] %vm3_vm0, %v317_v39   ;;  %322 = vst.msk [vmem:[#allocation0 + $0x83] ss:$8 sm:$0xf0] %vm3_vm0, %v317_v39  }
  0xac   :  { %v452_v40 = vld [vmem:[#allocation0 + $0x40] sm:$0xf]  ;;  %v458_v41 = vld [vmem:[#allocation0 + $0x48] sm:$0xf]  ;;  %v464_v42 = vld [vmem:[#allocation0 + $0x50] sm:$0xf]  ;;  %v344_v43 = vpop.permute.xlu1 %343   ;;  %v335_v44 = vpop.permute.xlu0 %334  }
  0xad   :  { %v470_v45 = vld [vmem:[#allocation0 + $0x58] sm:$0xf]  ;;  %v476_v46 = vld [vmem:[#allocation0 + $0x60] sm:$0xf]  ;;  %v482_v47 = vld [vmem:[#allocation0 + $0x68] sm:$0xf] }
  0xae   :  { %1124 = vst [vmem:[%s1682_s1 + $0x20] sm:$0xf] %v452_v40  ;;  %1125 = vst [vmem:[%s1682_s1 + $0x24] sm:$0xf] %v458_v41  ;;  %v488_v48 = vld [vmem:[#allocation0 + $0x70] sm:$0xf] }
  0xaf   :  { %1126 = vst [vmem:[%s1682_s1 + $0x28] sm:$0xf] %v464_v42  ;;  %347 = vst.msk [vmem:[#allocation0 + $0x143] ss:$8 sm:$0xf] %vm3_vm0, %v344_v43  }
  0xb0   :  { %349 = vst.msk [vmem:[#allocation0 + $0x143] ss:$8 sm:$0xf0] %vm3_vm0, %v344_v43   ;;  %338 = vst.msk [vmem:[#allocation0 + $0x103] ss:$8 sm:$0xf] %vm3_vm0, %v335_v44   ;;  %v362_v57 = vpop.permute.xlu1 %361   ;;  %v353_v58 = vpop.permute.xlu0 %352  }
  0xb1   :  { %340 = vst.msk [vmem:[#allocation0 + $0x103] ss:$8 sm:$0xf0] %vm3_vm0, %v335_v44   ;;  %v494_v49 = vld [vmem:[#allocation0 + $0x78] sm:$0xf] }
  0xb2   :  { %v407_v50 = vld [vmem:[#allocation0] sm:$0xf]  ;;  %1127 = vst [vmem:[%s1682_s1 + $0x2c] sm:$0xf] %v470_v45  ;;  %1128 = vst [vmem:[%s1682_s1 + $0x30] sm:$0xf] %v476_v46 }
  0xb3   :  { %1129 = vst [vmem:[%s1682_s1 + $0x34] sm:$0xf] %v482_v47  ;;  %409 = vst [vmem:[%s1682_s1] sm:$0xf] %v407_v50  ;;  %v411_v51 = vld [vmem:[#allocation0 + $0x8] sm:$0xf] }
  0xb4   :  { %v416_v52 = vld [vmem:[#allocation0 + $0x10] sm:$0xf]  ;;  %v422_v53 = vld [vmem:[#allocation0 + $0x18] sm:$0xf]  ;;  %1130 = vst [vmem:[%s1682_s1 + $0x38] sm:$0xf] %v488_v48  ;;  %v380_v7 = vpop.permute.xlu1 %379   ;;  %v371_v8 = vpop.permute.xlu0 %370  }
  0xb5   :  { %1131 = vst [vmem:[%s1682_s1 + $0x3c] sm:$0xf] %v494_v49  ;;  %1117 = vst [vmem:[%s1682_s1 + $0x4] sm:$0xf] %v411_v51  ;;  %v428_v54 = vld [vmem:[#allocation0 + $0x20] sm:$0xf] }
  0xb6   :  { %1118 = vst [vmem:[%s1682_s1 + $0x8] sm:$0xf] %v416_v52  ;;  %1119 = vst [vmem:[%s1682_s1 + $0xc] sm:$0xf] %v422_v53  ;;  %v434_v55 = vld [vmem:[#allocation0 + $0x28] sm:$0xf] }
  0xb7   :  { %v440_v56 = vld [vmem:[#allocation0 + $0x30] sm:$0xf]  ;;  %v446_v59 = vld [vmem:[#allocation0 + $0x38] sm:$0xf]  ;;  %v548_v60 = vld [vmem:[#allocation0 + $0xc0] sm:$0xf] }
  0xb8   :  { %v554_v61 = vld [vmem:[#allocation0 + $0xc8] sm:$0xf]  ;;  %1120 = vst [vmem:[%s1682_s1 + $0x10] sm:$0xf] %v428_v54  ;;  %1121 = vst [vmem:[%s1682_s1 + $0x14] sm:$0xf] %v434_v55  ;;  %v398_v21 = vpop.permute.xlu1 %397   ;;  %v389_v22 = vpop.permute.xlu0 %388  }
  0xb9   :  { %1122 = vst [vmem:[%s1682_s1 + $0x18] sm:$0xf] %v440_v56  ;;  %365 = vst.msk [vmem:[#allocation0 + $0x1c3] ss:$8 sm:$0xf] %vm3_vm0, %v362_v57  }
  0xba   :  { %367 = vst.msk [vmem:[#allocation0 + $0x1c3] ss:$8 sm:$0xf0] %vm3_vm0, %v362_v57   ;;  %356 = vst.msk [vmem:[#allocation0 + $0x183] ss:$8 sm:$0xf] %vm3_vm0, %v353_v58  }
  0xbb   :  { %358 = vst.msk [vmem:[#allocation0 + $0x183] ss:$8 sm:$0xf0] %vm3_vm0, %v353_v58   ;;  %1140 = vst [vmem:[%s1682_s1 + $0x60] sm:$0xf] %v548_v60 }
  0xbc   :  { %1141 = vst [vmem:[%s1682_s1 + $0x64] sm:$0xf] %v554_v61  ;;  %v560_v62 = vld [vmem:[#allocation0 + $0xd0] sm:$0xf]  ;;  %v566_v63 = vld [vmem:[#allocation0 + $0xd8] sm:$0xf] }
  0xbd   :  { %v572_v0 = vld [vmem:[#allocation0 + $0xe0] sm:$0xf]  ;;  %1123 = vst [vmem:[%s1682_s1 + $0x1c] sm:$0xf] %v446_v59  ;;  %1142 = vst [vmem:[%s1682_s1 + $0x68] sm:$0xf] %v560_v62 }
  0xbe   :  { %1143 = vst [vmem:[%s1682_s1 + $0x6c] sm:$0xf] %v566_v63  ;;  %1144 = vst [vmem:[%s1682_s1 + $0x70] sm:$0xf] %v572_v0  ;;  %v578_v1 = vld [vmem:[#allocation0 + $0xe8] sm:$0xf] }
  0xbf   :  { %v584_v2 = vld [vmem:[#allocation0 + $0xf0] sm:$0xf]  ;;  %v590_v3 = vld [vmem:[#allocation0 + $0xf8] sm:$0xf]  ;;  %1145 = vst [vmem:[%s1682_s1 + $0x74] sm:$0xf] %v578_v1 }
  0xc0   :  { %1146 = vst [vmem:[%s1682_s1 + $0x78] sm:$0xf] %v584_v2  ;;  %1147 = vst [vmem:[%s1682_s1 + $0x7c] sm:$0xf] %v590_v3  ;;  %v500_v4 = vld [vmem:[#allocation0 + $0x80] sm:$0xf] }
  0xc1   :  { %v506_v5 = vld [vmem:[#allocation0 + $0x88] sm:$0xf]  ;;  %v512_v6 = vld [vmem:[#allocation0 + $0x90] sm:$0xf]  ;;  %1132 = vst [vmem:[%s1682_s1 + $0x40] sm:$0xf] %v500_v4 }
  0xc2   :  { %1133 = vst [vmem:[%s1682_s1 + $0x44] sm:$0xf] %v506_v5  ;;  %1134 = vst [vmem:[%s1682_s1 + $0x48] sm:$0xf] %v512_v6  ;;  %v518_v9 = vld [vmem:[#allocation0 + $0x98] sm:$0xf] }
  0xc3   :  { %v524_v10 = vld [vmem:[#allocation0 + $0xa0] sm:$0xf]  ;;  %v530_v11 = vld [vmem:[#allocation0 + $0xa8] sm:$0xf]  ;;  %1135 = vst [vmem:[%s1682_s1 + $0x4c] sm:$0xf] %v518_v9 }
  0xc4   :  { %383 = vst.msk [vmem:[#allocation0 + $0x243] ss:$8 sm:$0xf] %vm3_vm0, %v380_v7   ;;  %385 = vst.msk [vmem:[#allocation0 + $0x243] ss:$8 sm:$0xf0] %vm3_vm0, %v380_v7  }
  0xc5   :  { %374 = vst.msk [vmem:[#allocation0 + $0x203] ss:$8 sm:$0xf] %vm3_vm0, %v371_v8   ;;  %376 = vst.msk [vmem:[#allocation0 + $0x203] ss:$8 sm:$0xf0] %vm3_vm0, %v371_v8  }
  0xc6   :  { %1136 = vst [vmem:[%s1682_s1 + $0x50] sm:$0xf] %v524_v10  ;;  %1137 = vst [vmem:[%s1682_s1 + $0x54] sm:$0xf] %v530_v11  ;;  %v536_v12 = vld [vmem:[#allocation0 + $0xb0] sm:$0xf] }
  0xc7   :  { %v542_v13 = vld [vmem:[#allocation0 + $0xb8] sm:$0xf]  ;;  %v644_v14 = vld [vmem:[#allocation0 + $0x140] sm:$0xf]  ;;  %1138 = vst [vmem:[%s1682_s1 + $0x58] sm:$0xf] %v536_v12 }
  0xc8   :  { %1139 = vst [vmem:[%s1682_s1 + $0x5c] sm:$0xf] %v542_v13  ;;  %1156 = vst [vmem:[%s1682_s1 + $0xa0] sm:$0xf] %v644_v14  ;;  %v650_v15 = vld [vmem:[#allocation0 + $0x148] sm:$0xf] }
  0xc9   :  { %v656_v16 = vld [vmem:[#allocation0 + $0x150] sm:$0xf]  ;;  %v662_v17 = vld [vmem:[#allocation0 + $0x158] sm:$0xf]  ;;  %1157 = vst [vmem:[%s1682_s1 + $0xa4] sm:$0xf] %v650_v15 }
  0xca   :  { %1158 = vst [vmem:[%s1682_s1 + $0xa8] sm:$0xf] %v656_v16  ;;  %1159 = vst [vmem:[%s1682_s1 + $0xac] sm:$0xf] %v662_v17  ;;  %v668_v18 = vld [vmem:[#allocation0 + $0x160] sm:$0xf] }
  0xcb   :  { %v674_v19 = vld [vmem:[#allocation0 + $0x168] sm:$0xf]  ;;  %v680_v20 = vld [vmem:[#allocation0 + $0x170] sm:$0xf]  ;;  %1160 = vst [vmem:[%s1682_s1 + $0xb0] sm:$0xf] %v668_v18 }
  0xcc   :  { %1161 = vst [vmem:[%s1682_s1 + $0xb4] sm:$0xf] %v674_v19  ;;  %1162 = vst [vmem:[%s1682_s1 + $0xb8] sm:$0xf] %v680_v20  ;;  %v686_v23 = vld [vmem:[#allocation0 + $0x178] sm:$0xf] }
  0xcd   :  { %v596_v24 = vld [vmem:[#allocation0 + $0x100] sm:$0xf]  ;;  %v602_v25 = vld [vmem:[#allocation0 + $0x108] sm:$0xf]  ;;  %1163 = vst [vmem:[%s1682_s1 + $0xbc] sm:$0xf] %v686_v23 }
  0xce   :  { %401 = vst.msk [vmem:[#allocation0 + $0x2c3] ss:$8 sm:$0xf] %vm3_vm0, %v398_v21   ;;  %403 = vst.msk [vmem:[#allocation0 + $0x2c3] ss:$8 sm:$0xf0] %vm3_vm0, %v398_v21  }
  0xcf   :  { %392 = vst.msk [vmem:[#allocation0 + $0x283] ss:$8 sm:$0xf] %vm3_vm0, %v389_v22   ;;  %394 = vst.msk [vmem:[#allocation0 + $0x283] ss:$8 sm:$0xf0] %vm3_vm0, %v389_v22  }
  0xd0   :  { %1148 = vst [vmem:[%s1682_s1 + $0x80] sm:$0xf] %v596_v24  ;;  %1149 = vst [vmem:[%s1682_s1 + $0x84] sm:$0xf] %v602_v25  ;;  %v608_v26 = vld [vmem:[#allocation0 + $0x110] sm:$0xf] }
  0xd1   :  { %v614_v27 = vld [vmem:[#allocation0 + $0x118] sm:$0xf]  ;;  %v620_v28 = vld [vmem:[#allocation0 + $0x120] sm:$0xf]  ;;  %1150 = vst [vmem:[%s1682_s1 + $0x88] sm:$0xf] %v608_v26 }
  0xd2   :  { %1151 = vst [vmem:[%s1682_s1 + $0x8c] sm:$0xf] %v614_v27  ;;  %1152 = vst [vmem:[%s1682_s1 + $0x90] sm:$0xf] %v620_v28  ;;  %v626_v29 = vld [vmem:[#allocation0 + $0x128] sm:$0xf] }
  0xd3   :  { %v632_v30 = vld [vmem:[#allocation0 + $0x130] sm:$0xf]  ;;  %v638_v31 = vld [vmem:[#allocation0 + $0x138] sm:$0xf]  ;;  %1153 = vst [vmem:[%s1682_s1 + $0x94] sm:$0xf] %v626_v29 }
  0xd4   :  { %1154 = vst [vmem:[%s1682_s1 + $0x98] sm:$0xf] %v632_v30  ;;  %1155 = vst [vmem:[%s1682_s1 + $0x9c] sm:$0xf] %v638_v31  ;;  %v740_v32 = vld [vmem:[#allocation0 + $0x1c0] sm:$0xf] }
  0xd5   :  { %v746_v33 = vld [vmem:[#allocation0 + $0x1c8] sm:$0xf]  ;;  %v752_v34 = vld [vmem:[#allocation0 + $0x1d0] sm:$0xf]  ;;  %1172 = vst [vmem:[%s1682_s1 + $0xe0] sm:$0xf] %v740_v32 }
  0xd6   :  { %1173 = vst [vmem:[%s1682_s1 + $0xe4] sm:$0xf] %v746_v33  ;;  %1174 = vst [vmem:[%s1682_s1 + $0xe8] sm:$0xf] %v752_v34  ;;  %v758_v35 = vld [vmem:[#allocation0 + $0x1d8] sm:$0xf] }
  0xd7   :  { %v764_v36 = vld [vmem:[#allocation0 + $0x1e0] sm:$0xf]  ;;  %v770_v37 = vld [vmem:[#allocation0 + $0x1e8] sm:$0xf]  ;;  %1175 = vst [vmem:[%s1682_s1 + $0xec] sm:$0xf] %v758_v35 }
  0xd8   :  { %1176 = vst [vmem:[%s1682_s1 + $0xf0] sm:$0xf] %v764_v36  ;;  %1177 = vst [vmem:[%s1682_s1 + $0xf4] sm:$0xf] %v770_v37  ;;  %v776_v38 = vld [vmem:[#allocation0 + $0x1f0] sm:$0xf] }
  0xd9   :  { %v782_v39 = vld [vmem:[#allocation0 + $0x1f8] sm:$0xf]  ;;  %v692_v40 = vld [vmem:[#allocation0 + $0x180] sm:$0xf]  ;;  %1178 = vst [vmem:[%s1682_s1 + $0xf8] sm:$0xf] %v776_v38 }
  0xda   :  { %1179 = vst [vmem:[%s1682_s1 + $0xfc] sm:$0xf] %v782_v39  ;;  %1164 = vst [vmem:[%s1682_s1 + $0xc0] sm:$0xf] %v692_v40  ;;  %v698_v41 = vld [vmem:[#allocation0 + $0x188] sm:$0xf] }
  0xdb   :  { %v704_v42 = vld [vmem:[#allocation0 + $0x190] sm:$0xf]  ;;  %v710_v43 = vld [vmem:[#allocation0 + $0x198] sm:$0xf]  ;;  %1165 = vst [vmem:[%s1682_s1 + $0xc4] sm:$0xf] %v698_v41 }
  0xdc   :  { %1166 = vst [vmem:[%s1682_s1 + $0xc8] sm:$0xf] %v704_v42  ;;  %1167 = vst [vmem:[%s1682_s1 + $0xcc] sm:$0xf] %v710_v43  ;;  %v716_v44 = vld [vmem:[#allocation0 + $0x1a0] sm:$0xf] }
  0xdd   :  { %v722_v45 = vld [vmem:[#allocation0 + $0x1a8] sm:$0xf]  ;;  %v728_v46 = vld [vmem:[#allocation0 + $0x1b0] sm:$0xf]  ;;  %1168 = vst [vmem:[%s1682_s1 + $0xd0] sm:$0xf] %v716_v44 }
  0xde   :  { %1169 = vst [vmem:[%s1682_s1 + $0xd4] sm:$0xf] %v722_v45  ;;  %1170 = vst [vmem:[%s1682_s1 + $0xd8] sm:$0xf] %v728_v46  ;;  %v734_v47 = vld [vmem:[#allocation0 + $0x1b8] sm:$0xf] }
  0xdf   :  { %v836_v48 = vld [vmem:[#allocation0 + $0x240] sm:$0xf]  ;;  %v842_v49 = vld [vmem:[#allocation0 + $0x248] sm:$0xf]  ;;  %1171 = vst [vmem:[%s1682_s1 + $0xdc] sm:$0xf] %v734_v47 }
  0xe0   :  { %1188 = vst [vmem:[%s1682_s1 + $0x120] sm:$0xf] %v836_v48  ;;  %1189 = vst [vmem:[%s1682_s1 + $0x124] sm:$0xf] %v842_v49  ;;  %v848_v50 = vld [vmem:[#allocation0 + $0x250] sm:$0xf] }
  0xe1   :  { %v854_v51 = vld [vmem:[#allocation0 + $0x258] sm:$0xf]  ;;  %v860_v52 = vld [vmem:[#allocation0 + $0x260] sm:$0xf]  ;;  %1190 = vst [vmem:[%s1682_s1 + $0x128] sm:$0xf] %v848_v50 }
  0xe2   :  { %1191 = vst [vmem:[%s1682_s1 + $0x12c] sm:$0xf] %v854_v51  ;;  %1192 = vst [vmem:[%s1682_s1 + $0x130] sm:$0xf] %v860_v52  ;;  %v866_v53 = vld [vmem:[#allocation0 + $0x268] sm:$0xf] }
  0xe3   :  { %v872_v54 = vld [vmem:[#allocation0 + $0x270] sm:$0xf]  ;;  %v878_v55 = vld [vmem:[#allocation0 + $0x278] sm:$0xf]  ;;  %1193 = vst [vmem:[%s1682_s1 + $0x134] sm:$0xf] %v866_v53 }
  0xe4   :  { %1194 = vst [vmem:[%s1682_s1 + $0x138] sm:$0xf] %v872_v54  ;;  %1195 = vst [vmem:[%s1682_s1 + $0x13c] sm:$0xf] %v878_v55  ;;  %v788_v56 = vld [vmem:[#allocation0 + $0x200] sm:$0xf] }
  0xe5   :  { %v794_v57 = vld [vmem:[#allocation0 + $0x208] sm:$0xf]  ;;  %v800_v58 = vld [vmem:[#allocation0 + $0x210] sm:$0xf]  ;;  %1180 = vst [vmem:[%s1682_s1 + $0x100] sm:$0xf] %v788_v56 }
  0xe6   :  { %1181 = vst [vmem:[%s1682_s1 + $0x104] sm:$0xf] %v794_v57  ;;  %1182 = vst [vmem:[%s1682_s1 + $0x108] sm:$0xf] %v800_v58  ;;  %v806_v59 = vld [vmem:[#allocation0 + $0x218] sm:$0xf] }
  0xe7   :  { %v812_v60 = vld [vmem:[#allocation0 + $0x220] sm:$0xf]  ;;  %v818_v61 = vld [vmem:[#allocation0 + $0x228] sm:$0xf]  ;;  %1183 = vst [vmem:[%s1682_s1 + $0x10c] sm:$0xf] %v806_v59 }
  0xe8   :  { %v824_v62 = vld [vmem:[#allocation0 + $0x230] sm:$0xf]  ;;  %v830_v63 = vld [vmem:[#allocation0 + $0x238] sm:$0xf]  ;;  %v932_v0 = vld [vmem:[#allocation0 + $0x2c0] sm:$0xf] }
  0xe9   :  { %1184 = vst [vmem:[%s1682_s1 + $0x110] sm:$0xf] %v812_v60  ;;  %1185 = vst [vmem:[%s1682_s1 + $0x114] sm:$0xf] %v818_v61  ;;  %v938_v1 = vld [vmem:[#allocation0 + $0x2c8] sm:$0xf] }
  0xea   :  { %1204 = vst [vmem:[%s1682_s1 + $0x160] sm:$0xf] %v932_v0  ;;  %v944_v2 = vld [vmem:[#allocation0 + $0x2d0] sm:$0xf]  ;;  %v950_v3 = vld [vmem:[#allocation0 + $0x2d8] sm:$0xf] }
  0xeb   :  { %1186 = vst [vmem:[%s1682_s1 + $0x118] sm:$0xf] %v824_v62  ;;  %1187 = vst [vmem:[%s1682_s1 + $0x11c] sm:$0xf] %v830_v63  ;;  %v956_v4 = vld [vmem:[#allocation0 + $0x2e0] sm:$0xf] }
  0xec   :  { %1205 = vst [vmem:[%s1682_s1 + $0x164] sm:$0xf] %v938_v1  ;;  %1206 = vst [vmem:[%s1682_s1 + $0x168] sm:$0xf] %v944_v2  ;;  %v962_v5 = vld [vmem:[#allocation0 + $0x2e8] sm:$0xf] }
  0xed   :  { %1207 = vst [vmem:[%s1682_s1 + $0x16c] sm:$0xf] %v950_v3  ;;  %v968_v6 = vld [vmem:[#allocation0 + $0x2f0] sm:$0xf]  ;;  %1208 = vst [vmem:[%s1682_s1 + $0x170] sm:$0xf] %v956_v4 }
  0xee   :  { %1209 = vst [vmem:[%s1682_s1 + $0x174] sm:$0xf] %v962_v5  ;;  %1210 = vst [vmem:[%s1682_s1 + $0x178] sm:$0xf] %v968_v6  ;;  %v974_v7 = vld [vmem:[#allocation0 + $0x2f8] sm:$0xf] }
  0xef   :  { %v884_v8 = vld [vmem:[#allocation0 + $0x280] sm:$0xf]  ;;  %v890_v9 = vld [vmem:[#allocation0 + $0x288] sm:$0xf]  ;;  %1211 = vst [vmem:[%s1682_s1 + $0x17c] sm:$0xf] %v974_v7 }
  0xf0   :  { %1196 = vst [vmem:[%s1682_s1 + $0x140] sm:$0xf] %v884_v8  ;;  %1197 = vst [vmem:[%s1682_s1 + $0x144] sm:$0xf] %v890_v9  ;;  %v896_v10 = vld [vmem:[#allocation0 + $0x290] sm:$0xf] }
  0xf1   :  { %v902_v11 = vld [vmem:[#allocation0 + $0x298] sm:$0xf]  ;;  %v908_v12 = vld [vmem:[#allocation0 + $0x2a0] sm:$0xf]  ;;  %1198 = vst [vmem:[%s1682_s1 + $0x148] sm:$0xf] %v896_v10 }
  0xf2   :  { %1199 = vst [vmem:[%s1682_s1 + $0x14c] sm:$0xf] %v902_v11  ;;  %1200 = vst [vmem:[%s1682_s1 + $0x150] sm:$0xf] %v908_v12  ;;  %v914_v13 = vld [vmem:[#allocation0 + $0x2a8] sm:$0xf] }
  0xf3   :  { %v920_v14 = vld [vmem:[#allocation0 + $0x2b0] sm:$0xf]  ;;  %v926_v15 = vld [vmem:[#allocation0 + $0x2b8] sm:$0xf]  ;;  %1201 = vst [vmem:[%s1682_s1 + $0x154] sm:$0xf] %v914_v13 }
  0xf4   :  { %1202 = vst [vmem:[%s1682_s1 + $0x158] sm:$0xf] %v920_v14  ;;  %1203 = vst [vmem:[%s1682_s1 + $0x15c] sm:$0xf] %v926_v15 }

// kernel: generator_full_model_forward.4
= control target key start
LH: loop header
LB: loop body
LE: loop exit
PB: predicated region body
PF: predicated region fallthrough
CT: control target
= control target key end

     0   :  { %9 = vsyncpa [#allocation3], 0  ;;  %s727_s15 = smov 0   ;;  %s853_s0 = inlined_call_operand.vmem [shape: f32[12], index: 0, kind: input, shape index: {}]   ;;  %s854_s1 = inlined_call_operand.vmem [shape: f32[2,256], index: 1, kind: input, shape index: {}]   ;;  %s855_s2 = inlined_call_operand.vmem [shape: f32[2,256], index: 2, kind: input, shape index: {}]   ;;  %s856_s3 = inlined_call_operand.vmem [shape: f32[4,25], index: 3, kind: input, shape index: {}]   ;;  %s857_s4 = inlined_call_operand.vmem [shape: f32[4,256], index: 4, kind: output, shape index: {}]  }
   0x1 LB: > { %s733_s16 = sadd.s32 4294967295, %s698_s15   ;;  %p616_p0 = scmp.ge.s32.totalorder %s698_s15, 1  ;;  %s698_s15 = sphi %s727_s15, %s15_s15  }
   0x2   : > { %p140_p1 = scmp.lt.s32.totalorder %s698_s15, 3  ;;  %s153_s19 = sshll.u32 %s853_s0, 4  ;;  %s154_s19 = int_to_ptr.vmem [resolvable:$true] %s153_s19 }
   0x3   : > { %p645_p3 = scmp.eq.s32.totalorder %s733_s16, 0  ;;  %s673_s21 = scalar_lea.vmem %s154_s19, 16 }
   0x4   : > { %p740_p2 = pnand %p616_p0, %p140_p1  ;;  %p674_p6 = scmp.ne.s32.totalorder %s154_s19, %s673_s21 }
   0x5   : > { %p681_p10 = scmp.lt.s32.totalorder %s154_s19, %s154_s19  ;;  %p682_p11 = scmp.lt.s32.totalorder %s673_s21, %s673_s21 }
   0x6   : > { %p641_p4 = pneg %p740_p2 }
   0x7   : > { %p683_p12 = por %p682_p11, %p681_p10 }
   0x8   : > { %p642_p5 = pnand %p645_p3, %p641_p4 }
   0xa   : > { %p675_p7 = pneg %p642_p5 }
   0xc   : > { %p676_p8 = pnand %p675_p7, %p674_p6 }
   0xe   : > { %p677_p9 = pneg %p676_p8 }
  0x10   : > { %p684_p13 = pnand %p683_p12, %p677_p9 }
  0x12   : > { %687 = shalt.err (!%p684_p13)
}
  0x13   : > { %s700_s22 = smov [#allocation2]   ;;  %183 = sbr.rel (%p740_p2) target bundleno = 211 (0xd3), region = 36 }
  0x14   : > { %644 = dma.vmem_to_smem (!%p642_p5), %s154_s19, 16, %s700_s22, [#allocation3]  }
  0x1a   : > { %693 = dma.done.wait (%p645_p3), [#allocation3], 16  }
  0x1b   : > { %695 = vsyncadd (%p645_p3), [#allocation3], 4294967280 }
  0x1c   : > { %189 = sfence }
  0x1d   : > { %v231_v0 = vlaneseq  ;;  %p212_p0 = scmp.lt.s32.totalorder %s733_s16, 1  ;;  %v701_v1 = vmov 1966171168   ;;  %v226_v4 = vld [vmem:[%s856_s3] sm:$0xf]  ;;  %s799_s6 = sld [smem:[#allocation2 + $0x3]] }
  0x1e   : > { %v229_v2 = vunpack.c.l.s4 %v701_v1  ;;  %s801_s7 = sld [smem:[#allocation2 + $0x4]]  ;;  %s803_s8 = sld [smem:[#allocation2 + $0x6]]  ;;  %vm459_vm0 = vcmask 1040384   ;;  %vm532_vm1 = vcmask 1041408   ;;  %vm534_vm2 = vcmask 1042432  }
  0x1f   : > { %v232_v3 = vshrl.u32 %v231_v0, 7  ;;  %s860_s16 = smov (!%p212_p0, %s733_s16), 1  ;;  %s805_s9 = sld [smem:[#allocation2 + $0x7]] }
  0x20   : > { %v230_v5 = vunpack.c.0.s8 %v229_v2  ;;  %s621_s25 = sshll.u32 %s860_s16, 1  ;;  %s807_s10 = sld [smem:[#allocation2 + $0x9]] }
  0x21   : > { %v312_v6 = vsub.s32 3, %v232_v3  ;;  %v252_v7 = vsub.s32 2, %v232_v3  ;;  %s219_s28 = scalar_lea.vmem %s855_s2, %s621_s25  ;;  %s215_s5 = scalar_lea.vmem %s854_s1, %s621_s25  ;;  %v271_v15 = vsub.s32 0, %v232_v3  ;;  %v392_v27 = vsub.s32 1, %v232_v3 }
  0x22   : > { %v233_v8 = vsub.s32 %v230_v5, %v232_v3  ;;  %v769_v11 = vld [vmem:[%s219_s28] sm:$0x3]  ;;  %s809_s11 = sld [smem:[#allocation2 + $0xa]]  ;;  %s811_s12 = sld [smem:[#allocation2]] }
  0x23   : > { %v313_v9 = vrot.slane %v226_v4, %v312_v6  ;;  %v253_v10 = vrot.slane %v226_v4, %v252_v7  ;;  %v771_v12 = vld [vmem:[%s215_s5] sm:$0x3]  ;;  %v374_v26 = vrot.slane %v226_v4, %v271_v15  ;;  %v393_v28 = vrot.slane %v226_v4, %v392_v27  ;;  %s813_s13 = sld [smem:[#allocation2 + $0x1]]  ;;  %s817_s14 = sld [smem:[#allocation2 + $0x5]] }
  0x24   : > { %v294_v13 = vrot.slane %v769_v11, %v233_v8  ;;  %v234_v14 = vrot.slane %v771_v12, %v233_v8  ;;  %s823_s17 = sld [smem:[#allocation2 + $0x8]]  ;;  %s825_s18 = sld [smem:[#allocation2 + $0xb]] }
  0x25   : > { %315 = vbcast.lane.b32.xlu1 %v313_v9, 256  ;;  %255 = vbcast.lane.b32.xlu0 %v253_v10, 256  ;;  %s829_s19 = sld [smem:[#allocation2 + $0x2]]  ;;  %s623_s20 = sshll.u32 %s860_s16, 2 }
  0x26   : > { %v295_v16 = vcombine.high %v294_v13, %v294_v13  ;;  %v302_v17 = vrot.slane %v294_v13, %v233_v8  ;;  %v235_v18 = vcombine.high %v234_v14, %v234_v14  ;;  %v242_v19 = vrot.slane %v234_v14, %v233_v8  ;;  %s223_s23 = scalar_lea.vmem %s857_s4, %s623_s20 }
  0x28   : > { %v309_v20 = vrot.slane %v295_v16, %v233_v8  ;;  %v775_v21 = vrot.slane %v302_v17, %v271_v15  ;;  %v249_v22 = vrot.slane %v235_v18, %v233_v8  ;;  %v777_v23 = vrot.slane %v242_v19, %v271_v15 }
  0x29   : > { %319 = vbcast.lane.b32.xlu1 %v313_v9, 264  ;;  %259 = vbcast.lane.b32.xlu0 %v253_v10, 264 }
  0x2a   : > { %v779_v24 = vrot.slane %v309_v20, %v271_v15  ;;  %v781_v25 = vrot.slane %v249_v22, %v271_v15 }
  0x2d   : > { %323 = vbcast.lane.b32.xlu1 %v313_v9, 272  ;;  %263 = vbcast.lane.b32.xlu0 %v253_v10, 272 }
  0x31   : > { %327 = vbcast.lane.b32.xlu1 %v313_v9, 280  ;;  %267 = vbcast.lane.b32.xlu0 %v253_v10, 280 }
  0x35   : > { %380 = vbcast.lane.b32.xlu1 %v374_v26, 264  ;;  %376 = vbcast.lane.b32.xlu0 %v374_v26, 256 }
  0x39   : > { %399 = vbcast.lane.b32.xlu1 %v393_v28, 264  ;;  %395 = vbcast.lane.b32.xlu0 %v393_v28, 256 }
  0x3d   : > { %388 = vbcast.lane.b32.xlu1 %v374_v26, 280  ;;  %384 = vbcast.lane.b32.xlu0 %v374_v26, 272 }
  0x41   : > { %407 = vbcast.lane.b32.xlu1 %v393_v28, 280  ;;  %403 = vbcast.lane.b32.xlu0 %v393_v28, 272 }
  0x97   : > { %v316_v29 = vpop.permute.xlu1 %315  ;;  %v256_v30 = vpop.permute.xlu0 %255 }
  0x98   : > { %v339_v31 = vsub.f32 %v775_v21, %v316_v29  ;;  %v343_v32 = vsub.f32 %v779_v24, %v316_v29  ;;  %v279_v33 = vsub.f32 %v777_v23, %v256_v30  ;;  %v283_v34 = vsub.f32 %v781_v25, %v256_v30 }
  0x9a   : > { %v355_v35 = vand.u32 2147483647, %v339_v31  ;;  %v359_v36 = vand.u32 2147483647, %v343_v32  ;;  %v347_v37 = vand.u32 2147483647, %v279_v33 }
  0x9b   : > { %v351_v38 = vand.u32 2147483647, %v283_v34  ;;  %v320_v39 = vpop.permute.xlu1 %319  ;;  %v260_v40 = vpop.permute.xlu0 %259 }
  0x9c   : > { %v363_v41 = vadd.f32 %v355_v35, %v347_v37  ;;  %v340_v42 = vsub.f32 %v775_v21, %v320_v39  ;;  %v344_v43 = vsub.f32 %v779_v24, %v320_v39  ;;  %v280_v44 = vsub.f32 %v777_v23, %v260_v40 }
  0x9d   : > { %v367_v45 = vadd.f32 %v359_v36, %v351_v38  ;;  %v284_v46 = vsub.f32 %v781_v25, %v260_v40 }
  0x9e   : > { %v425_v47 = vadd.f32 1e-06, %v363_v41  ;;  %v356_v48 = vand.u32 2147483647, %v340_v42  ;;  %v360_v49 = vand.u32 2147483647, %v344_v43  ;;  %v409_v31 = vmul.f32 %v363_v41, %v363_v41 }
  0x9f   : > { %v429_v50 = vadd.f32 1e-06, %v367_v45  ;;  %v348_v51 = vand.u32 2147483647, %v280_v44  ;;  %v352_v52 = vand.u32 2147483647, %v284_v46  ;;  %v324_v53 = vpop.permute.xlu1 %323  ;;  %v264_v54 = vpop.permute.xlu0 %263 }
  0xa0   : > { %v341_v55 = vsub.f32 %v775_v21, %v324_v53  ;;  %v345_v56 = vsub.f32 %v779_v24, %v324_v53  ;;  %v281_v57 = vsub.f32 %v777_v23, %v264_v54  ;;  %657 = vlog2.f32 %v425_v47 }
  0xa1   : > { %v364_v58 = vadd.f32 %v356_v48, %v348_v51  ;;  %v368_v59 = vadd.f32 %v360_v49, %v352_v52  ;;  %v285_v60 = vsub.f32 %v781_v25, %v264_v54  ;;  %659 = vlog2.f32 %v429_v50 }
  0xa2   : > { %v357_v61 = vand.u32 2147483647, %v341_v55  ;;  %v361_v62 = vand.u32 2147483647, %v345_v56  ;;  %v349_v63 = vand.u32 2147483647, %v281_v57 }
  0xa3   : > { %v426_v0 = vadd.f32 1e-06, %v364_v58  ;;  %v430_v1 = vadd.f32 1e-06, %v368_v59  ;;  %v353_v2 = vand.u32 2147483647, %v285_v60  ;;  %v328_v3 = vpop.permute.xlu1 %327  ;;  %v268_v4 = vpop.permute.xlu0 %267  ;;  %v410_v30 = vmul.f32 %v364_v58, %v364_v58 }
  0xa4   : > { %v365_v5 = vadd.f32 %v357_v61, %v349_v63  ;;  %v342_v6 = vsub.f32 %v775_v21, %v328_v3  ;;  %v346_v7 = vsub.f32 %v779_v24, %v328_v3  ;;  %v282_v8 = vsub.f32 %v777_v23, %v268_v4 }
  0xa5   : > { %661 = vlog2.f32 %v426_v0  ;;  %v369_v9 = vadd.f32 %v361_v62, %v353_v2  ;;  %v286_v10 = vsub.f32 %v781_v25, %v268_v4  ;;  %v413_v25 = vmul.f32 %v367_v45, %v367_v45 }
  0xa6   : > { %663 = vlog2.f32 %v430_v1  ;;  %v427_v13 = vadd.f32 1e-06, %v365_v5  ;;  %v358_v14 = vand.u32 2147483647, %v342_v6  ;;  %v362_v15 = vand.u32 2147483647, %v346_v7 }
  0xa7   : > { %v431_v16 = vadd.f32 1e-06, %v369_v9  ;;  %v350_v17 = vand.u32 2147483647, %v282_v8  ;;  %v354_v18 = vand.u32 2147483647, %v286_v10  ;;  %v381_v19 = vpop.permute.xlu1 %380  ;;  %v377_v20 = vpop.permute.xlu0 %376  ;;  %v414_v34 = vmul.f32 %v368_v59, %v368_v59 }
  0xa8   : > { %665 = vlog2.f32 %v427_v13  ;;  %v418_v39 = vmul.f32 %v410_v30, %v381_v19  ;;  %v417_v42 = vmul.f32 %v409_v31, %v377_v20  ;;  %v411_v47 = vmul.f32 %v365_v5, %v365_v5 }
  0xa9   : > { %667 = vlog2.f32 %v431_v16  ;;  %v366_v21 = vadd.f32 %v358_v14, %v350_v17  ;;  %v370_v22 = vadd.f32 %v362_v15, %v354_v18  ;;  %v415_v50 = vmul.f32 %v369_v9, %v369_v9 }
  0xaa   : > { %v658_v24 = vpop.eup %657  ;;  %v492_v10 = vstv %s799_s6  ;;  %v494_v15 = vstv %s801_s7  ;;  %v506_v16 = vstv %s803_s8  ;;  %v508_v17 = vstv %s805_s9 }
  0xab   : > { %v428_v26 = vadd.f32 1e-06, %v366_v21  ;;  %v432_v23 = vadd.f32 1e-06, %v370_v22  ;;  %v400_v27 = vpop.permute.xlu1 %399  ;;  %v396_v28 = vpop.permute.xlu0 %395  ;;  %v434_v32 = vmul.f32 0.6931472, %v658_v24  ;;  %v412_v61 = vmul.f32 %v366_v21, %v366_v21 }
  0xac   : > { %v660_v29 = vpop.eup %659  ;;  %v421_v35 = vmul.f32 %v413_v25, %v396_v28  ;;  %v422_v44 = vmul.f32 %v414_v34, %v400_v27  ;;  %v416_v2 = vmul.f32 %v370_v22, %v370_v22  ;;  %v514_v20 = vstv %s807_s10 }
  0xad   : > { %669 = vlog2.f32 %v428_v26  ;;  %v442_v36 = vmul.f32 0.6931472, %v660_v29  ;;  %v449_v45 = vmul.f32 %v434_v32, %v417_v42  ;;  %v516_v21 = vstv %s809_s11 }
  0xae   : > { %671 = vlog2.f32 %v432_v23  ;;  %v484_v22 = vstv %s811_s12  ;;  %v486_v24 = vstv %s813_s13  ;;  %v493_v27 = vmul.f32 %v492_v10, %v771_v12 }
  0xaf   : > { %v662_v33 = vpop.eup %661  ;;  %v385_v37 = vpop.permute.xlu0 %384  ;;  %v453_v52 = vmul.f32 %v442_v36, %v421_v35  ;;  %v495_v28 = vmul.f32 %v494_v15, %v769_v11  ;;  %v507_v29 = vmul.f32 %v506_v16, %v771_v12  ;;  %v509_v30 = vmul.f32 %v508_v17, %v769_v11 }
  0xb0   : > { %v664_v38 = vpop.eup %663  ;;  %v436_v40 = vmul.f32 0.6931472, %v662_v33  ;;  %v389_v43 = vpop.permute.xlu1 %388  ;;  %v419_v53 = vmul.f32 %v411_v47, %v385_v37  ;;  %v515_v31 = vmul.f32 %v514_v20, %v771_v12  ;;  %v517_v32 = vmul.f32 %v516_v21, %v769_v11 }
  0xb1   : > { %v444_v46 = vmul.f32 0.6931472, %v664_v38  ;;  %v420_v4 = vmul.f32 %v412_v61, %v389_v43  ;;  %v485_v34 = vmul.f32 %v484_v22, %v771_v12  ;;  %v487_v35 = vmul.f32 %v486_v24, %v769_v11 }
  0xb2   : > { %v666_v48 = vpop.eup %665  ;;  %v450_v49 = vmul.f32 %v436_v40, %v418_v39  ;;  %v496_v38 = vadd.f32 %v495_v28, %v493_v27  ;;  %v497_v39 = vstv %s817_s14  ;;  %v510_v42 = vadd.f32 %v509_v30, %v507_v29 }
  0xb3   : > { %v668_v51 = vpop.eup %667  ;;  %v454_v41 = vmul.f32 %v444_v46, %v422_v44  ;;  %v438_v54 = vmul.f32 0.6931472, %v666_v48  ;;  %v404_v55 = vpop.permute.xlu0 %403  ;;  %v518_v43 = vadd.f32 %v517_v32, %v515_v31  ;;  %v488_v46 = vadd.f32 %v487_v35, %v485_v34 }
  0xb4   : > { %v457_v56 = vadd.f32 %v450_v49, %v449_v45  ;;  %v423_v57 = vmul.f32 %v415_v50, %v404_v55  ;;  %v446_v58 = vmul.f32 0.6931472, %v668_v51  ;;  %v408_v62 = vpop.permute.xlu1 %407  ;;  %v511_v47 = vstv %s823_s17 }
  0xb5   : > { %v468_v59 = vadd.f32 %v454_v41, %v453_v52  ;;  %v451_v60 = vmul.f32 %v438_v54, %v419_v53  ;;  %v424_v7 = vmul.f32 %v416_v2, %v408_v62  ;;  %v519_v48 = vstv %s825_s18 }
  0xb6   : > { %v455_v63 = vmul.f32 %v446_v58, %v423_v57  ;;  %v489_v49 = vstv %s829_s19  ;;  %v498_v51 = vadd.f32 %v497_v39, %v496_v38  ;;  %v512_v12 = vadd.f32 %v511_v47, %v510_v42 }
  0xb7   : > { %v670_v0 = vpop.eup %669  ;;  %v458_v1 = vadd.f32 %v457_v56, %v451_v60  ;;  %v520_v52 = vadd.f32 %v519_v48, %v518_v43  ;;  %v490_v53 = vadd.f32 %v489_v49, %v488_v46 }
  0xb8   : > { %v672_v3 = vpop.eup %671  ;;  %v440_v5 = vmul.f32 0.6931472, %v670_v0  ;;  %v469_v6 = vadd.f32 %v468_v59, %v455_v63 }
  0xb9   : > { %v448_v8 = vmul.f32 0.6931472, %v672_v3 }
  0xba   : > { %v452_v9 = vmul.f32 %v440_v5, %v420_v4 }
  0xbb   : > { %v456_v13 = vmul.f32 %v448_v8, %v424_v7 }
  0xbc   : > { %v460_v14 = vsel %vm459_vm0, %v452_v9, 0.0 }
  0xbd   : > { %v461_v18 = vadd.f32 %v460_v14, %v458_v1  ;;  %v470_v19 = vsel %vm459_vm0, %v456_v13, 0.0 }
  0xbe   : > { %v471_v26 = vadd.f32 %v470_v19, %v469_v6 }
  0xbf   : > { %v462_v23 = vrot.slane %v461_v18, 4 }
  0xc0   : > { %v472_v25 = vrot.slane %v471_v26, 4 }
  0xc1   : > { %v463_v33 = vadd.f32 %v462_v23, %v461_v18 }
  0xc2   : > { %v473_v36 = vadd.f32 %v472_v25, %v471_v26 }
  0xc3   : > { %v464_v37 = vrot.slane %v463_v33, 2 }
  0xc4   : > { %v474_v40 = vrot.slane %v473_v36, 2 }
  0xc5   : > { %v465_v44 = vadd.f32 %v464_v37, %v463_v33 }
  0xc6   : > { %v475_v45 = vadd.f32 %v474_v40, %v473_v36 }
  0xc7   : > { %v466_v50 = vrot.slane %v465_v44, 1 }
  0xc8   : > { %v476_v41 = vrot.slane %v475_v45, 1 }
  0xc9   : > { %v467_v11 = vadd.f32 %v466_v50, %v465_v44 }
  0xca   : > { %v477_v54 = vadd.f32 %v476_v41, %v475_v45 }
  0xcb   : > { %v499_v55 = vadd.f32 %v498_v51, %v467_v11  ;;  %v491_v58 = vadd.f32 %v490_v53, %v467_v11 }
  0xcc   : > { %v513_v56 = vadd.f32 %v512_v12, %v477_v54  ;;  %v521_v57 = vadd.f32 %v520_v52, %v477_v54 }
  0xcd   : > { %v523_v59 = vrot.slane %v499_v55, 7 }
  0xce   : > { %v526_v60 = vrot.slane %v513_v56, 7  ;;  %v529_v62 = vrot.slane %v521_v57, 6 }
  0xcf   : > { %v531_v61 = vsel %vm459_vm0, %v491_v58, %v523_v59 }
  0xd0   : > { %v533_v63 = vsel %vm532_vm1, %v531_v61, %v526_v60 }
  0xd1   : > { %v535_v0 = vsel %vm534_vm2, %v533_v63, %v529_v62 }
  0xd2   : > { %536 = vst [vmem:[%s223_s23] sm:$0xf] %v535_v0 }
  0xd3 PF: > { %s15_s15 = sadd.s32 1, %s698_s15  }
  0xd4   : > { %p12_p1 = scmp.ge.s32.totalorder %s15_s15, 4  }
  0xd6   :  { %14 = sbr.rel (!%p12_p1) target bundleno = 1 (0x1), region = 74 }
  0xdd   :  { %556 = vsyncpa [#allocation3], 1 }
  0xde   :  { %558 = vsyncpa [#allocation3 + $0x1], 1 }

// kernel: generator_full_model_forward.3
= control target key start
LH: loop header
LB: loop body
LE: loop exit
PB: predicated region body
PF: predicated region fallthrough
CT: control target
= control target key end

     0   :  { %s472_s12 = smov 0   ;;  %s501_s0 = inlined_call_operand.vmem [shape: f32[12,20,20], index: 0, kind: input, shape index: {}]   ;;  %s502_s1 = inlined_call_operand.vmem [shape: f32[8,20], index: 1, kind: input, shape index: {}]   ;;  %s503_s2 = inlined_call_operand.vmem [shape: f32[20,128], index: 2, kind: input, shape index: {}]   ;;  %s504_s3 = inlined_call_operand.vmem [shape: f32[12,8,128], index: 3, kind: output, shape index: {}]  }
   0x1 LB: > { %s384_s13 = sadd.s32 4294967295, %s447_s12   ;;  %p388_p0 = scmp.ge.s32.totalorder %s447_s12, 1  ;;  %s447_s12 = sphi %s472_s12, %s13_s12  }
   0x2   : > { %p137_p1 = scmp.lt.s32.totalorder %s447_s12, 13 }
   0x4   : > { %p138_p2 = pnand %p388_p0, %p137_p1 }
   0x5   : > { %p160_p3 = scmp.lt.s32.totalorder (!%p138_p2), %s384_s13, 11  ;;  %v449_v0 = vmov (!%p138_p2), 0.0|0.0   ;;  %vm450_vm0 = vmmov (!%p138_p2), 0   ;;  %v451_v1 = vmov (!%p138_p2), 0.0   ;;  %v251_v2 = vld [vmem:[%s503_s2] sm:$0xff] (!%p138_p2)  ;;  %v252_v3 = vld [vmem:[%s503_s2 + $0x8] sm:$0xff] (!%p138_p2) }
   0x6   : > { %141 = sbr.rel (%p138_p2) target bundleno = 450 (0x1c2), region = 32  ;;  %423 = vmatprep.subr.bf16.mxu0 (!%p138_p2), %v449_v0  ;;  %411 = vmatprep.mubr.msk.f32.mxu0 (!%p138_p2), %vm450_vm0, %v451_v1  ;;  %v427_v4 = vpack.c.bf16 (!%p138_p2), %v252_v3, %v251_v2  ;;  %vm177_vm1 = vcmask (!%p138_p2), 1043456   ;;  %v172_v9 = vld [vmem:[%s502_s1] sm:$0xff] (!%p138_p2)  ;;  %vm173_vm2 = vcmask (!%p138_p2), 162816   ;;  %v253_v10 = vld [vmem:[%s503_s2 + $0x10] sm:$0xf] (!%p138_p2) }
   0x7   : > { %426 = vmatprep.subr.bf16.mxu1 (!%p138_p2), %v449_v0  ;;  %420 = vmatprep.mubr.msk.f32.mxu1 (!%p138_p2), %vm450_vm0, %v451_v1 }
   0x8   : > { %428 = vmatpush3.bf16.msra.mxu1 (!%p138_p2), %v427_v4 }
   0x9   : > { %418 = vmatprep.subr.mxu1 (!%p138_p2), %v451_v1 }
   0xc   : > { %419 = vmatpush3.msk.msra.mxu1 (!%p138_p2), %vm177_vm1, %v253_v10 }
   0xd   : > { %s506_s13 = smov (!%p160_p3, %s384_s13), 11 }
   0xe   : > { %s429_s18 = smul.u32 24, %s506_s13  ;;  %s390_s26 = sshll.u32 %s506_s13, 3 }
   0xf   : > { %s168_s29 = scalar_lea.vmem %s504_s3, %s390_s26 }
  0x10   : > { %s164_s21 = scalar_lea.vmem %s501_s0, %s429_s18 }
  0x11   : > { %v169_v5 = vld [vmem:[%s164_s21] sm:$0xff]  ;;  %v170_v6 = vld [vmem:[%s164_s21 + $0x8] sm:$0xff]  ;;  %v171_v8 = vld [vmem:[%s164_s21 + $0x10] sm:$0xf] }
  0x12   : > { %v424_v7 = vpack.c.bf16 %v170_v6, %v169_v5 }
  0x14   : > { %425 = vmatpush3.bf16.msra.mxu0 %v424_v7 }
  0x15   : > { %409 = vmatprep.subr.mxu0 %v451_v1 }
  0x18   : > { %410 = vmatpush3.msk.msra.mxu0 %vm177_vm1, %v171_v8 }
  0x19   : > { %412 = vmatmul.mubr.msk.f32.vlgmr.msra.gmra.mrb[0].mxu0 %vm173_vm2, %v172_v9 }
  0xec   : > { %v247_v11 = vpop.f32.mrb[0].mxu0 }
  0xed   : > { %v413_v12 = vpop.f32.mrb[1].mxu0  ;;  %421 = vmatmul.mubr.msk.f32.vlgmr.msra.gmra.mrb[0].mxu1 %vm173_vm2, %v247_v11 }
 0x1c0   : > { %v326_v13 = vpop.f32.mrb[0].mxu1 }
 0x1c1   : > { %330 = vst [vmem:[%s168_s29] sm:$0xff] %v326_v13  ;;  %v422_v14 = vpop.f32.mrb[1].mxu1 }
 0x1c2 PF: > { %s13_s12 = sadd.s32 1, %s447_s12  }
 0x1c3   : > { %p10_p4 = scmp.ge.s32.totalorder %s13_s12, 14  }
 0x1c5   :  { %12 = sbr.rel (!%p10_p4) target bundleno = 1 (0x1), region = 62 }

// kernel: custom-call.11
= control target key start
LH: loop header
LB: loop body
LE: loop exit
PB: predicated region body
PF: predicated region fallthrough
CT: control target
= control target key end

     0   :  { %5 = vsyncpa [#allocation6], 0  ;;  %s896_s0 = inlined_call_operand.vmem [shape: f32[2,3,3], index: 0, kind: input, shape index: {}]   ;;  %s897_s1 = inlined_call_operand.vmem [shape: f32[2,3,3], index: 1, kind: output, shape index: {0}]   ;;  %s898_s2 = inlined_call_operand.hbm [shape: s32[2,3], index: 2, kind: output, shape index: {1}]   ;;  %s899_s3 = inlined_call_operand.vmem [shape: s32[2,3], index: 3, kind: output, shape index: {2}]  }
   0x1   :  { %7 = vsyncpa [#allocation6 + $0x1], 0  ;;  %s715_s12 = smov 0   ;;  %s717_s13 = smov 0  }
   0x2   :  { %s719_s14 = smov 0   ;;  %s721_s15 = smov 0  }
   0x3 LB: > { %s736_s16 = sadd.s32 4294967295, %s687_s15   ;;  %s550_s17 = sadd.s32 4294967294, %s687_s15   ;;  %s687_s15 = sphi %s721_s15, %s907_s15   ;;  %s683_s14 = sphi %s719_s14, %s906_s14   ;;  %s679_s13 = sphi %s717_s13, %s905_s13   ;;  %s675_s12 = sphi %s715_s12, %s904_s12  }
   0x4   : > { %s740_s18 = sadd.s32 1, %s687_s15   ;;  %s17_s19 = sshrl.u32 %s687_s15, 3 }
   0x5   : > { %s18_s20 = sshrl.u32 %s740_s18, 3  ;;  %s22_s21 = sadd.s32 1, %s683_s14 }
   0x6   : > { %s19_s22 = ssub.s32 %s17_s19, %s18_s20  ;;  %p32_p0 = scmp.ne.s32.totalorder %s683_s14, %s679_s13 }
   0x7   : > { %p20_p1 = scmp.eq.s32.totalorder %s19_s22, 0  ;;  %p33_p2 = scmp.eq.s32.totalorder %s736_s16, 1 }
   0x8   : > { %p38_p3 = scmp.ne.s32.totalorder %s679_s13, %s675_s12  ;;  %p39_p4 = scmp.eq.s32.totalorder %s550_s17, 1 }
   0x9   : > { %s751_s23 = scalar_select %p20_p1, %s683_s14, %s22_s21  }
   0xa   : > { %p753_p5 = por %p33_p2, %p32_p0  ;;  %p757_p6 = por %p39_p4, %p38_p3 }
   0xb   : > { %p552_p7 = scmp.ge.s32.totalorder %s687_s15, 2 }
   0xc   : > { %s85_s26 = sand.u32 (!%p552_p7), 1, %s687_s15   ;;  %s554_s27 = sshll.u32 (!%p552_p7), %s687_s15, 2 }
   0xd   : > { %83 = sbr.rel (%p552_p7) target bundleno = 20 (0x14), region = 16  ;;  %s553_s28 = sshll.u32 (!%p552_p7), %s85_s26, 2 }
   0xe   : > { %s89_s4 = scalar_lea.vmem (!%p552_p7), %s896_s0, %s554_s27  ;;  %s87_s5 = scalar_lea.vmem (!%p552_p7), [#allocation1], %s553_s28 }
   0xf   : > { %v105_v0 = vld [vmem:[%s89_s4] sm:$0xf] (!%p552_p7) }
  0x10   : > { %106 = vst [vmem:[%s87_s5] sm:$0xf] (!%p552_p7), %v105_v0 }
  0x14 PF: > { %p555_p8 = scmp.ge.s32.totalorder %s687_s15, 1  ;;  %p122_p9 = scmp.lt.s32.totalorder %s687_s15, 3 }
  0x16   : > { %p123_p10 = pnand %p555_p8, %p122_p9 }
  0x18   : > { %126 = sbr.rel (%p123_p10) target bundleno = 451 (0x1c3), region = 50 }
  0x1f   : > { %s133_s6 = sand.u32 1, %s736_s16   ;;  %s144_s7 = sand.u32 1, %s679_s13   ;;  %v166_v1 = vlaneseq  ;;  %v693_v4 = vmov 0  }
  0x20   : > { %s773_s8 = sshll.u32 %s133_s6, 2  ;;  %s777_s9 = sshll.u32 %s144_s7, 1 }
  0x21   : > { %v780_v2 = vshrl.u32 %v166_v1, 7  ;;  %s135_s10 = scalar_lea.vmem [#allocation1], %s773_s8  ;;  %s161_s11 = sand.u32 7, %s736_s16  }
  0x22   : > { %v155_v3 = vld [vmem:[%s135_s10] sm:$0xf]  ;;  %s785_s17 = scalar_lea.vmem [#allocation4], %s161_s11  ;;  %s139_s19 = scalar_lea.vmem [#allocation3], %s773_s8 }
  0x23   : > { %156 = vst [vmem:[#allocation0] sm:$0xf] %v155_v3  ;;  %170 = vst [vmem:[#allocation9] sm:$0xff] %v780_v2  ;;  %s146_s20 = scalar_lea.vmem [#allocation5], %s777_s9  ;;  %s152_s21 = scalar_lea.vmem [#allocation8], %s777_s9 }
  0x24   : > { %165 = vst [vmem:[%s785_s17] sm:$0x1] %v693_v4  ;;  %s791_s22 = scalar_lea.vmem [#allocation7], %s161_s11  ;;  %s793_s26 = smov 0  }
  0x2a   : > { %v159_v5 = vld [vmem:[#allocation0] sm:$0xff] }
  0x2b   : > { %160 = vst [vmem:[#allocation2] sm:$0xff] %v159_v5 }
  0x2c LB: >> { %vm186_vm0 = vcmp.lt.s32.totalorder %v780_v2, 3  ;;  %v800_v8 = vstv %s691_s26  ;;  %s227_s27 = ssub.s32 128, %s691_s26  ;;  %v233_v38 = vand.u32 127, %v166_v1  ;;  %v236_v40 = vld [vmem:[%s785_s17] ss:$0 sm:$0xff]  ;;  %s239_s28 = scalar_lea.vmem [#allocation2], %s691_s26  ;;  %s691_s26 = sphi %s793_s26, %s176_s26  }
  0x2d   : >> { %vm185_vm1 = vcmp.ge.s32.totalorder %v780_v2, %v800_v8  ;;  %s245_s30 = scalar_lea.vmem [#allocation9], %s691_s26  ;;  %vm265_vm15 = vcmp.gt.s32.totalorder %v780_v2, %v800_v8  ;;  %s176_s26 = sadd.s32 1, %s691_s26  }
  0x2e   : >> { %vm187_vm3 = vmand %vm185_vm1, %vm186_vm0  ;;  %vm257_vm12 = vcmp.gt.s32.totalorder %v233_v38, %v800_v8  ;;  %vm234_vm13 = vcmp.eq.s32.totalorder %v233_v38, %v800_v8  ;;  %v247_v42 = vld [vmem:[%s245_s30] ss:$0 sm:$0xff]  ;;  %p173_p11 = scmp.ge.s32.totalorder %s176_s26, 3  }
  0x2f   : >> { %vm269_vm1 = vmand %vm265_vm15, %vm234_vm13  ;;  %s900_s6 = sshrl.u32 (%p173_p11), %s736_s16, 3  ;;  %s564_s10 = sshll.u32 (%p173_p11), %s736_s16, 2 }
  0x30   : > { %s565_s11 = sshll.u32 (%p173_p11), %s900_s6, 5 }
  0x32   : >> { %v181_v6 = vld [vmem:[#allocation2] sm:$0xff]  ;;  %v241_v41 = vld [vmem:[%s239_s28] ss:$0 sm:$0xff] }
  0x33   : >> { %v182_v7 = vand.u32 2147483647, %v181_v6 }
  0x35   : >> { %vm560_vm2 = vcmp.gt.f32.partialorder %v182_v7, -inf }
  0x36   : >> { %vm189_vm4 = vmand %vm187_vm3, %vm560_vm2 }
  0x37   : >> { %v190_v9 = vsel %vm189_vm4, %v780_v2, %v800_v8  ;;  %v191_v10 = vsel %vm189_vm4, %v182_v7, -inf }
  0x38   : >> { %v192_v11 = vrot.slane %v191_v10, 1  ;;  %v193_v12 = vrot.slane %v190_v9, 1 }
  0x3a   : >> { %vm194_vm5 = vcmp.ge.f32.partialorder %v192_v11, %v191_v10  ;;  %v197_v13 = vrot.slane %v192_v11, 1  ;;  %v198_v14 = vrot.slane %v193_v12, 1 }
  0x3b   : >> { %v195_v15 = vsel %vm194_vm5, %v192_v11, %v191_v10  ;;  %v196_v16 = vsel %vm194_vm5, %v193_v12, %v190_v9 }
  0x3c   : >> { %vm199_vm6 = vcmp.ge.f32.partialorder %v197_v13, %v195_v15  ;;  %v202_v17 = vrot.slane %v197_v13, 1  ;;  %v203_v18 = vrot.slane %v198_v14, 1 }
  0x3d   : >> { %v200_v19 = vsel %vm199_vm6, %v197_v13, %v195_v15  ;;  %v201_v20 = vsel %vm199_vm6, %v198_v14, %v196_v16 }
  0x3e   : >> { %vm204_vm7 = vcmp.ge.f32.partialorder %v202_v17, %v200_v19  ;;  %v207_v21 = vrot.slane %v202_v17, 1  ;;  %v208_v22 = vrot.slane %v203_v18, 1 }
  0x3f   : >> { %v205_v23 = vsel %vm204_vm7, %v202_v17, %v200_v19  ;;  %v206_v24 = vsel %vm204_vm7, %v203_v18, %v201_v20 }
  0x40   : >> { %vm209_vm8 = vcmp.ge.f32.partialorder %v207_v21, %v205_v23  ;;  %v212_v25 = vrot.slane %v207_v21, 1  ;;  %v213_v26 = vrot.slane %v208_v22, 1 }
  0x41   : >> { %v210_v27 = vsel %vm209_vm8, %v207_v21, %v205_v23  ;;  %v211_v28 = vsel %vm209_vm8, %v208_v22, %v206_v24 }
  0x42   : >> { %vm214_vm9 = vcmp.ge.f32.partialorder %v212_v25, %v210_v27  ;;  %v217_v29 = vrot.slane %v212_v25, 1  ;;  %v218_v30 = vrot.slane %v213_v26, 1 }
  0x43   : >> { %v215_v31 = vsel %vm214_vm9, %v212_v25, %v210_v27  ;;  %v216_v32 = vsel %vm214_vm9, %v213_v26, %v211_v28 }
  0x44   : >> { %vm219_vm10 = vcmp.ge.f32.partialorder %v217_v29, %v215_v31  ;;  %v222_v33 = vrot.slane %v217_v29, 1  ;;  %v223_v34 = vrot.slane %v218_v30, 1 }
  0x45   : >> { %v220_v35 = vsel %vm219_vm10, %v217_v29, %v215_v31  ;;  %v221_v36 = vsel %vm219_vm10, %v218_v30, %v216_v32 }
  0x46   : >> { %vm224_vm11 = vcmp.ge.f32.partialorder %v222_v33, %v220_v35 }
  0x47   : >> { %v226_v37 = vsel %vm224_vm11, %v223_v34, %v221_v36 }
  0x48   : >> { %228 = vrot.lane.b32.xlu0 %v226_v37, %s227_s27  ;;  %s357_s27 = scalar_lea.vmem (%p173_p11), %s897_s1, %s564_s10 }
  0xba   : >> { %v229_v39 = vpop.permute.xlu0 %228 }
  0xbb   : >> { %569 = vpush %v229_v39 }
  0xec   : >> { %s570_s29 = spop %569 }
  0xed   : >> { %v235_v43 = vstv %s570_s29  ;;  %s240_s4 = scalar_lea.vmem [#allocation2], %s570_s29  ;;  %s246_s5 = scalar_lea.vmem [#allocation9], %s570_s29 }
  0xee   : >> { %v242_v44 = vld [vmem:[%s240_s4] ss:$0 sm:$0xff]  ;;  %v237_v46 = vsel %vm234_vm13, %v235_v43, %v236_v40 }
  0xef   : >> { %v248_v45 = vld [vmem:[%s246_s5] ss:$0 sm:$0xff]  ;;  %243 = vst [vmem:[%s240_s4] sm:$0x1] %v241_v41  ;;  %vm251_vm14 = vcmp.ne.f32.partialorder %v242_v44, 0.0  ;;  %238 = vst [vmem:[%s785_s17] sm:$0x1] %v237_v46  ;;  %v258_v53 = vsel %vm257_vm12, %v242_v44, 0.0 }
  0xf0   : >> { %249 = vst [vmem:[%s246_s5] sm:$0x1] %v247_v42  ;;  %244 = vst [vmem:[%s239_s28] sm:$0x1] %v242_v44  ;;  %s399_s4 = sshll.u32 (%p173_p11), %s146_s20, 4  ;;  %s348_s5 = scalar_lea.sflag (%p173_p11), [#allocation6], %s144_s7  ;;  %s400_s4 = int_to_ptr.vmem [resolvable:$true] %s399_s4 }
  0xf1   : >> { %250 = vst [vmem:[%s245_s30] sm:$0x1] %v248_v45  ;;  %vm252_vm0 = vmand %vm234_vm13, %vm251_vm14  ;;  %s843_s30 = scalar_lea.hbm (%p173_p11), %s898_s2, %s565_s11  ;;  %s621_s6 = scalar_lea.vmem (%p173_p11), %s400_s4, 32 }
  0xf2   : >> { %v253_v47 = vsel %vm252_vm0, %v242_v44, 1.0  ;;  %p622_p12 = scmp.ne.s32.totalorder (%p173_p11), %s400_s4, %s621_s6  ;;  %s694_s17 = smov (%p173_p11), [#allocation5]  }
  0xf3   : >> { %v266_v48 = vsel %vm265_vm15, %v253_v47, 1.0  ;;  %s625_s10 = sshll.u32 (%p173_p11), %s694_s17, 4  ;;  %s626_s10 = int_to_ptr.vmem [resolvable:$false] %s625_s10 }
  0xf4   : >> { %619 = vrcp.f32 %v266_v48  ;;  %p623_p13 = pnand (%p173_p11), %p622_p12, %p753_p5  ;;  %s627_s8 = scalar_lea.vmem (%p173_p11), %s626_s10, 64 }
  0xf5   : > { %p628_p1 = scmp.lt.s32.totalorder (%p173_p11), %s400_s4, %s626_s10  ;;  %p629_p2 = scmp.lt.s32.totalorder (%p173_p11), %s627_s8, %s621_s6 }
  0xf6   : > { %v334_v59 = vld [vmem:[#allocation4] sm:$0x3] (%p173_p11)  ;;  %p624_p0 = pneg (%p173_p11), %p623_p13 }
  0xf7   : >> { %v262_v50 = vld [vmem:[#allocation2] sm:$0xff]  ;;  %336 = vst [vmem:[%s146_s20] sm:$0x3] (%p173_p11), %v334_v59  ;;  %p630_p3 = por (%p173_p11), %p629_p2, %p628_p1 }
  0xf8   : > { %v276_v57 = vld [vmem:[#allocation9] sm:$0xff] (%p173_p11) }
  0xf9   : > { %p631_p4 = pnand (%p173_p11), %p630_p3, %p624_p0 }
  0xfe   : >> { %v620_v49 = vpop.eup %619 }
  0xff   : >> { %v268_v51 = vmul.f32 %v620_v49, %v262_v50 }
 0x101   : >> { %v270_v52 = vsel %vm269_vm1, %v268_v51, 0.0 }
 0x102   : >> { %271 = vadd.xlane.f32.xlu0 %v270_v52 }
 0x12f   : > { %292 = vxpose.xlu0.b32.start.end [1/1] (short) (narrow) (%p173_p11), %v276_v57, 8 }
 0x18e   : > { %175 = sbr.rel (!%p173_p11) target bundleno = 44 (0x2c), region = 202 }
 0x18f   : >> { %v272_v54 = vpop.xlane.xlu0 %271 }
 0x190   : >> { %v273_v55 = vmul.f32 %v272_v54, %v258_v53 }
 0x192   : >> { %v274_v56 = vsub.f32 %v268_v51, %v273_v55 }
 0x194   : >> { %275 = vst [vmem:[#allocation2] sm:$0xff] %v274_v56 }
 0x19b   : > { %v328_v58 = vld [vmem:[#allocation2] sm:$0xf] }
 0x19c   : > { %330 = vst [vmem:[%s139_s19] sm:$0xf] %v328_v58 }
 0x1a3   : > { %v373_v60 = vld [vmem:[%s139_s19] sm:$0xf] }
 0x1a4   : > { %374 = vst [vmem:[%s357_s27] sm:$0xf] %v373_v60 }
 0x1a5   : > { %634 = shalt.err (!%p631_p4)
}
 0x1a6   : > { %s635_s7 = scalar_lea.hbm %s843_s30, 32  ;;  %s639_s11 = scalar_lea.hbm %s898_s2, 32 }
 0x1a7   : > { %p636_p8 = scmp.ne.s32.totalorder %s843_s30, %s635_s7  ;;  %p640_p11 = scmp.lt.u32.totalorder %s843_s30, %s898_s2 }
 0x1a8   : > { %p641_p12 = scmp.lt.u32.totalorder %s639_s11, %s635_s7  ;;  %p643_p0 = scmp.lt.u32.totalorder %s635_s7, %s843_s30 }
 0x1a9   : > { %p637_p9 = pnand %p636_p8, %p753_p5 }
 0x1aa   : > { %p642_p13 = por %p641_p12, %p640_p11 }
 0x1ab   : > { %p638_p10 = pneg %p637_p9 }
 0x1ac   : > { %p644_p1 = por %p643_p0, %p642_p13 }
 0x1ae   : > { %p645_p2 = pnand %p644_p1, %p638_p10 }
 0x1b0   : > { %648 = shalt.err (!%p645_p2)
}
 0x1b1   : > { %571 = dma.vmem_to_hbm [thread:$0]  (%p753_p5), %s400_s4, 32, %s843_s30, %s348_s5   ;;  %v308_v61 = vpop.trf.xlu0 }
 0x1b2   : > { %324 = vst [vmem:[%s791_s22] sm:$0x1] %v308_v61  ;;  %s903_s6 = sshrl.u32 (%p753_p5), %s736_s16, 3 }
 0x1b3   : > { %s566_s28 = sshll.u32 (%p753_p5), %s903_s6, 1 }
 0x1b4   : > { %405 = sbr.rel (!%p753_p5) target bundleno = 451 (0x1c3), region = 96  ;;  %s408_s10 = scalar_lea.vmem (%p753_p5), %s899_s3, %s566_s28 }
 0x1b9   : > { %v340_v62 = vld [vmem:[#allocation7] sm:$0x3] }
 0x1ba   : > { %342 = vst [vmem:[%s152_s21] sm:$0x3] %v340_v62 }
 0x1c1   : > { %v424_v63 = vld [vmem:[%s152_s21] sm:$0x3] }
 0x1c2   : > { %425 = vst [vmem:[%s408_s10] sm:$0x3] %v424_v63 }
 0x1c3 PF: > { %s452_s22 = sand.u32 1, %s675_s12   ;;  %p574_p5 = pnand %p552_p7, %p757_p6 }
 0x1c4   : > { %s453_s24 = scalar_lea.sflag [#allocation6], %s452_s22 }
 0x1c5   : > { %670 = dma.done.wait (!%p574_p5), %s453_s24, 32  }
 0x1c6   : > { %672 = vsyncadd (!%p574_p5), %s453_s24, 4294967264  ;;  %p10_p3 = scmp.ge.s32.totalorder %s740_s18, 4   ;;  %s904_s12 = smov %s679_s13 }
 0x1c7   : > { %s905_s13 = smov %s683_s14  ;;  %s906_s14 = smov %s751_s23 }
 0x1c8   : > { %s907_s15 = smov %s740_s18  ;;  %12 = sbr.rel (!%p10_p3) target bundleno = 3 (0x3), region = 213 }
 0x1cf   :  { %465 = vsyncpa [#allocation6], 1 }
 0x1d0   :  { %467 = vsyncpa [#allocation6 + $0x1], 1 }

// kernel: custom-call.13
= control target key start
LH: loop header
LB: loop body
LE: loop exit
PB: predicated region body
PF: predicated region fallthrough
CT: control target
= control target key end

     0   :  { %s343_s6 = smov 0   ;;  %s345_s7 = smov 0   ;;  %s390_s0 = inlined_call_operand.vmem [shape: f32[2,1,3,3], index: 0, kind: input, shape index: {}]   ;;  %s391_s1 = inlined_call_operand.vmem [shape: f32[2,1,3,3], index: 1, kind: output, shape index: {}]  }
   0x1   :  { %s347_s8 = smov 0  }
   0x2 LB: > { %s269_s9 = sadd.s32 4294967295, %s330_s8   ;;  %s33_s10 = sadd.s32 1, %s326_s7  ;;  %s330_s8 = sphi %s347_s8, %s7_s8   ;;  %s326_s7 = sphi %s345_s7, %s393_s7   ;;  %s322_s6 = sphi %s343_s6, %s392_s6  }
   0x3   : > { %p35_p0 = scmp.ge.s32.totalorder %s33_s10, 2  ;;  %p271_p1 = scmp.ge.s32.totalorder %s330_s8, 2 }
   0x4   : > { %s49_s11 = sand.u32 (!%p271_p1), 1, %s330_s8   ;;  %s273_s12 = sshll.u32 (!%p271_p1), %s326_s7, 2 }
   0x5   : > { %s395_s10 = smov (%p35_p0, %s33_s10), 0  ;;  %47 = sbr.rel (%p271_p1) target bundleno = 12 (0xc), region = 16 }
   0x6   : > { %s272_s13 = sshll.u32 (!%p271_p1), %s49_s11, 2  ;;  %s56_s16 = scalar_lea.vmem (!%p271_p1), %s390_s0, %s273_s12 }
   0x7   : > { %v72_v0 = vld [vmem:[%s56_s16] sm:$0xf] (!%p271_p1)  ;;  %s51_s17 = scalar_lea.vmem (!%p271_p1), [#allocation1], %s272_s13 }
   0x8   : > { %73 = vst [vmem:[%s51_s17] sm:$0xf] (!%p271_p1), %v72_v0 }
   0xc PF: > { %p274_p2 = scmp.ge.s32.totalorder %s330_s8, 1  ;;  %p89_p3 = scmp.lt.s32.totalorder %s330_s8, 3 }
   0xe   : > { %p90_p4 = pnand %p274_p2, %p89_p3 }
  0x10   : > { %93 = sbr.rel (%p90_p4) target bundleno = 511 (0x1ff), region = 50 }
  0x17   : > { %s370_s18 = sand.u32 1, %s269_s9   ;;  %v111_v1 = vlaneseq  ;;  %v332_v11 = vmov -1.0   ;;  %s278_s22 = sshll.u32 %s322_s6, 2 }
  0x18   : > { %s275_s19 = sshll.u32 %s370_s18, 2  ;;  %s178_s25 = scalar_lea.vmem %s391_s1, %s278_s22 }
  0x19   : > { %s102_s20 = scalar_lea.vmem [#allocation1], %s275_s19  ;;  %v112_v3 = vand.u32 127, %v111_v1  ;;  %v115_v4 = vshrl.u32 %v111_v1, 7  ;;  %s106_s21 = scalar_lea.vmem [#allocation3], %s275_s19 }
  0x1a   : > { %v109_v2 = vld [vmem:[%s102_s20] sm:$0xf] }
  0x1b   : > { %110 = vst [vmem:[#allocation0] sm:$0xf] %v109_v2  ;;  %vm113_vm0 = vcmp.lt.s32.totalorder %v112_v3, 3  ;;  %vm122_vm1 = vcmp.ge.s32.totalorder %v115_v4, %v112_v3  ;;  %vm117_vm2 = vcmp.eq.s32.totalorder %v115_v4, %v112_v3  ;;  %vm136_vm4 = vcmp.eq.s32.totalorder %v112_v3, 0 }
  0x1c   : > { %vm123_vm3 = vmand %vm122_vm1, %vm113_vm0  ;;  %vm133_vm5 = vcmp.eq.s32.totalorder %v112_v3, %v115_v4  ;;  %v137_v12 = vsel %vm136_vm4, 1.0, %v332_v11  ;;  %vm144_vm6 = vcmp.eq.s32.totalorder %v112_v3, 1  ;;  %vm154_vm7 = vcmp.eq.s32.totalorder %v112_v3, 2 }
  0x1d   : > { %v138_v13 = vsel %vm133_vm5, %v137_v12, 0.0 }
  0x22   : > { %v118_v5 = vld [vmem:[#allocation0] sm:$0xff] }
  0x23   : > { %v119_v6 = vsel %vm117_vm2, %v118_v5, 0.0  ;;  %v124_v7 = vsel %vm123_vm3, %v118_v5, 0.0 }
  0x24   : > { %120 = vadd.xlane.f32.xlu0 %v119_v6 }
  0xb1   : > { %v121_v8 = vpop.xlane.xlu0 %120 }
  0xb2   : > { %306 = vrcp.f32 %v121_v8  ;;  %vm161_vm8 = vweird.f32 %v121_v8 }
  0xbc   : > { %v307_v9 = vpop.eup %306 }
  0xbd   : > { %v126_v10 = vmul.f32 %v307_v9, %v124_v7 }
  0xbf   : > { %127 = vst [vmem:[#allocation4] sm:$0xff] %v126_v10 }
  0xc6   : > { %v140_v14 = vld [vmem:[#allocation4 + $0x1] ss:$0 sm:$0xff]  ;;  %v150_v17 = vld [vmem:[#allocation4 + $0x2] ss:$0 sm:$0xff] }
  0xc7   : > { %v141_v15 = vxor.u32 2147483648, %v140_v14  ;;  %v151_v19 = vxor.u32 2147483648, %v150_v17 }
  0xc9   : > { %v145_v16 = vmul.f32 %v141_v15, %v138_v13 }
  0xcb   : > { %146 = vadd.xlane.f32.xlu0 %v145_v16 }
 0x158   : > { %v147_v18 = vpop.xlane.xlu0 %146 }
 0x159   : > { %v148_v20 = vsel %vm144_vm6, %v147_v18, %v138_v13 }
 0x15a   : > { %v155_v21 = vmul.f32 %v151_v19, %v148_v20 }
 0x15c   : > { %156 = vadd.xlane.f32.xlu1 %v155_v21 }
 0x1e9   : > { %v157_v22 = vpop.xlane.xlu1 %156 }
 0x1ea   : > { %v158_v23 = vsel %vm154_vm7, %v157_v22, %v148_v20 }
 0x1eb   : > { %v160_v24 = vmul.f32 %v307_v9, %v158_v23 }
 0x1ed   : > { %v162_v25 = vsel %vm161_vm8, %v158_v23, %v160_v24 }
 0x1ee   : > { %163 = vst [vmem:[#allocation2] sm:$0xff] %v162_v25 }
 0x1f5   : > { %v167_v26 = vld [vmem:[#allocation2] sm:$0xf] }
 0x1f6   : > { %169 = vst [vmem:[%s106_s21] sm:$0xf] %v167_v26 }
 0x1fd   : > { %v194_v27 = vld [vmem:[%s106_s21] sm:$0xf] }
 0x1fe   : > { %195 = vst [vmem:[%s178_s25] sm:$0xf] %v194_v27 }
 0x1ff PF: > { %s7_s8 = sadd.s32 1, %s330_s8   ;;  %s392_s6 = smov %s326_s7 }
 0x200   : > { %p4_p5 = scmp.ge.s32.totalorder %s7_s8, 4   ;;  %s393_s7 = smov %s395_s10 }
 0x202   :  { %6 = sbr.rel (!%p4_p5) target bundleno = 2 (0x2), region = 112 }

// kernel: custom-call.12
= control target key start
LH: loop header
LB: loop body
LE: loop exit
PB: predicated region body
PF: predicated region fallthrough
CT: control target
= control target key end

     0   :  { %s342_s6 = smov 0   ;;  %s344_s7 = smov 0   ;;  %s389_s0 = inlined_call_operand.vmem [shape: f32[2,1,3,3], index: 0, kind: input, shape index: {}]   ;;  %s390_s1 = inlined_call_operand.vmem [shape: f32[2,1,3,3], index: 1, kind: output, shape index: {}]  }
   0x1   :  { %s346_s8 = smov 0  }
   0x2 LB: > { %s268_s9 = sadd.s32 4294967295, %s329_s8   ;;  %s33_s10 = sadd.s32 1, %s325_s7  ;;  %s329_s8 = sphi %s346_s8, %s7_s8   ;;  %s325_s7 = sphi %s344_s7, %s392_s7   ;;  %s321_s6 = sphi %s342_s6, %s391_s6  }
   0x3   : > { %p35_p0 = scmp.ge.s32.totalorder %s33_s10, 2  ;;  %p270_p1 = scmp.ge.s32.totalorder %s329_s8, 2 }
   0x4   : > { %s49_s11 = sand.u32 (!%p270_p1), 1, %s329_s8   ;;  %s272_s12 = sshll.u32 (!%p270_p1), %s325_s7, 2 }
   0x5   : > { %s394_s10 = smov (%p35_p0, %s33_s10), 0  ;;  %47 = sbr.rel (%p270_p1) target bundleno = 12 (0xc), region = 16 }
   0x6   : > { %s271_s13 = sshll.u32 (!%p270_p1), %s49_s11, 2  ;;  %s56_s16 = scalar_lea.vmem (!%p270_p1), %s389_s0, %s272_s12 }
   0x7   : > { %v72_v0 = vld [vmem:[%s56_s16] sm:$0xf] (!%p270_p1)  ;;  %s51_s17 = scalar_lea.vmem (!%p270_p1), [#allocation1], %s271_s13 }
   0x8   : > { %73 = vst [vmem:[%s51_s17] sm:$0xf] (!%p270_p1), %v72_v0 }
   0xc PF: > { %p273_p2 = scmp.ge.s32.totalorder %s329_s8, 1  ;;  %p89_p3 = scmp.lt.s32.totalorder %s329_s8, 3 }
   0xe   : > { %p90_p4 = pnand %p273_p2, %p89_p3 }
  0x10   : > { %93 = sbr.rel (%p90_p4) target bundleno = 511 (0x1ff), region = 50 }
  0x17   : > { %s369_s18 = sand.u32 1, %s268_s9   ;;  %v111_v1 = vlaneseq  ;;  %v331_v11 = vmov -1.0   ;;  %s277_s22 = sshll.u32 %s321_s6, 2 }
  0x18   : > { %s274_s19 = sshll.u32 %s369_s18, 2  ;;  %s177_s25 = scalar_lea.vmem %s390_s1, %s277_s22 }
  0x19   : > { %s102_s20 = scalar_lea.vmem [#allocation1], %s274_s19  ;;  %v112_v3 = vand.u32 127, %v111_v1  ;;  %v115_v4 = vshrl.u32 %v111_v1, 7  ;;  %s106_s21 = scalar_lea.vmem [#allocation3], %s274_s19 }
  0x1a   : > { %v109_v2 = vld [vmem:[%s102_s20] sm:$0xf] }
  0x1b   : > { %110 = vst [vmem:[#allocation0] sm:$0xf] %v109_v2  ;;  %vm113_vm0 = vcmp.lt.s32.totalorder %v112_v3, 3  ;;  %vm122_vm1 = vcmp.le.s32.totalorder %v115_v4, %v112_v3  ;;  %vm117_vm2 = vcmp.eq.s32.totalorder %v115_v4, %v112_v3  ;;  %vm136_vm4 = vcmp.eq.s32.totalorder %v112_v3, 2 }
  0x1c   : > { %vm123_vm3 = vmand %vm122_vm1, %vm113_vm0  ;;  %vm133_vm5 = vcmp.eq.s32.totalorder %v112_v3, %v115_v4  ;;  %v137_v12 = vsel %vm136_vm4, 1.0, %v331_v11  ;;  %vm144_vm6 = vcmp.eq.s32.totalorder %v112_v3, 1  ;;  %vm153_vm7 = vcmp.eq.s32.totalorder %v112_v3, 0 }
  0x1d   : > { %v138_v13 = vsel %vm133_vm5, %v137_v12, 0.0 }
  0x22   : > { %v118_v5 = vld [vmem:[#allocation0] sm:$0xff] }
  0x23   : > { %v119_v6 = vsel %vm117_vm2, %v118_v5, 0.0  ;;  %v124_v7 = vsel %vm123_vm3, %v118_v5, 0.0 }
  0x24   : > { %120 = vadd.xlane.f32.xlu0 %v119_v6 }
  0xb1   : > { %v121_v8 = vpop.xlane.xlu0 %120 }
  0xb2   : > { %305 = vrcp.f32 %v121_v8  ;;  %vm160_vm8 = vweird.f32 %v121_v8 }
  0xbc   : > { %v306_v9 = vpop.eup %305 }
  0xbd   : > { %v126_v10 = vmul.f32 %v306_v9, %v124_v7 }
  0xbf   : > { %127 = vst [vmem:[#allocation4] sm:$0xff] %v126_v10 }
  0xc6   : > { %v140_v14 = vld [vmem:[#allocation4 + $0x1] ss:$0 sm:$0xff]  ;;  %v149_v17 = vld [vmem:[#allocation4] ss:$0 sm:$0xff] }
  0xc7   : > { %v141_v15 = vxor.u32 2147483648, %v140_v14  ;;  %v150_v19 = vxor.u32 2147483648, %v149_v17 }
  0xc9   : > { %v145_v16 = vmul.f32 %v141_v15, %v138_v13 }
  0xcb   : > { %146 = vadd.xlane.f32.xlu0 %v145_v16 }
 0x158   : > { %v147_v18 = vpop.xlane.xlu0 %146 }
 0x159   : > { %v148_v20 = vsel %vm144_vm6, %v147_v18, %v138_v13 }
 0x15a   : > { %v154_v21 = vmul.f32 %v150_v19, %v148_v20 }
 0x15c   : > { %155 = vadd.xlane.f32.xlu1 %v154_v21 }
 0x1e9   : > { %v156_v22 = vpop.xlane.xlu1 %155 }
 0x1ea   : > { %v157_v23 = vsel %vm153_vm7, %v156_v22, %v148_v20 }
 0x1eb   : > { %v159_v24 = vmul.f32 %v306_v9, %v157_v23 }
 0x1ed   : > { %v161_v25 = vsel %vm160_vm8, %v157_v23, %v159_v24 }
 0x1ee   : > { %162 = vst [vmem:[#allocation2] sm:$0xff] %v161_v25 }
 0x1f5   : > { %v166_v26 = vld [vmem:[#allocation2] sm:$0xf] }
 0x1f6   : > { %168 = vst [vmem:[%s106_s21] sm:$0xf] %v166_v26 }
 0x1fd   : > { %v193_v27 = vld [vmem:[%s106_s21] sm:$0xf] }
 0x1fe   : > { %194 = vst [vmem:[%s177_s25] sm:$0xf] %v193_v27 }
 0x1ff PF: > { %s7_s8 = sadd.s32 1, %s329_s8   ;;  %s391_s6 = smov %s325_s7 }
 0x200   : > { %p4_p5 = scmp.ge.s32.totalorder %s7_s8, 4   ;;  %s392_s7 = smov %s394_s10 }
 0x202   :  { %6 = sbr.rel (!%p4_p5) target bundleno = 2 (0x2), region = 111 }

// kernel: generator_full_model_forward.5
= control target key start
LH: loop header
LB: loop body
LE: loop exit
PB: predicated region body
PF: predicated region fallthrough
CT: control target
= control target key end

     0   :  { %s472_s0 = inlined_call_operand.vmem [shape: s32[23], index: 0, kind: input, shape index: {}]   ;;  %s473_s3 = inlined_call_operand.vmem [shape: f32[736,128], index: 3, kind: input, shape index: {}]   ;;  %s474_s4 = inlined_call_operand.vmem [shape: f32[736,128], index: 4, kind: input, shape index: {}]   ;;  %s475_s5 = inlined_call_operand.vmem [shape: f32[23,1,1], index: 5, kind: output, shape index: {}]   ;;  %s476_s1 = inlined_call_operand.vmem [shape: s32[23], index: 1, kind: input, shape index: {}]   ;;  %s477_s2 = inlined_call_operand.vmem [shape: s32[23], index: 2, kind: input, shape index: {}]  }
   0x1   :  { %s10_s20 = sshll.u32 %s472_s0, 4  ;;  %s14_s23 = sshll.u32 %s476_s1, 4  ;;  %s11_s20 = int_to_ptr.vmem [resolvable:$true] %s10_s20  ;;  %s15_s23 = int_to_ptr.vmem [resolvable:$true] %s14_s23 }
   0x2   :  { %s349_s24 = scalar_lea.vmem %s11_s20, 16  ;;  %p354_p1 = scmp.lt.s32.totalorder %s11_s20, %s11_s20 }
   0x3   :  { %p350_p0 = scmp.ne.s32.totalorder %s11_s20, %s349_s24  ;;  %p355_p2 = scmp.lt.s32.totalorder %s349_s24, %s349_s24 }
   0x5   :  { %p356_p3 = por %p355_p2, %p354_p1 }
   0x7   :  { %p357_p4 = pnand %p356_p3, %p350_p0 }
   0x9   :  { %360 = shalt.err (!%p357_p4)  }
   0xa   :  { %s395_s25 = smov [#allocation3]   ;;  %s361_s26 = scalar_lea.vmem %s15_s23, 16 }
   0xb   :  { %13 = dma.vmem_to_smem %s11_s20, 16, %s395_s25, [#allocation2] }
   0xc   :  { %p362_p5 = scmp.ne.s32.totalorder %s15_s23, %s361_s26  ;;  %p366_p6 = scmp.lt.s32.totalorder %s15_s23, %s15_s23 }
   0xd   :  { %p367_p7 = scmp.lt.s32.totalorder %s361_s26, %s361_s26 }
   0xf   :  { %p368_p8 = por %p367_p7, %p366_p6 }
  0x11   :  { %p369_p9 = pnand %p368_p8, %p362_p5 }
  0x13   :  { %372 = shalt.err (!%p369_p9)  }
  0x14   :  { %s396_s0 = smov [#allocation4]   ;;  %s18_s28 = sshll.u32 %s477_s2, 4  ;;  %s19_s28 = int_to_ptr.vmem [resolvable:$true] %s18_s28 }
  0x15   :  { %17 = dma.vmem_to_smem %s15_s23, 16, %s396_s0, [#allocation2] }
  0x16   :  { %s373_s29 = scalar_lea.vmem %s19_s28, 16  ;;  %p378_p11 = scmp.lt.s32.totalorder %s19_s28, %s19_s28 }
  0x17   :  { %p374_p10 = scmp.ne.s32.totalorder %s19_s28, %s373_s29  ;;  %p379_p12 = scmp.lt.s32.totalorder %s373_s29, %s373_s29 }
  0x19   :  { %p380_p13 = por %p379_p12, %p378_p11 }
  0x1b   :  { %p381_p0 = pnand %p380_p13, %p374_p10 }
  0x1d   :  { %384 = shalt.err (!%p381_p0)  }
  0x1e   :  { %s397_s30 = smov [#allocation5]  }
  0x1f   :  { %21 = dma.vmem_to_smem %s19_s28, 16, %s397_s30, [#allocation2] }
  0x20   :  { %389 = dma.done.wait [#allocation2], 48 }
  0x21   :  { %390 = vsyncadd [#allocation2], 4294967248 }
  0x22   :  { %23 = sfence }
  0x23   :  { %s438_s6 = smov 0  }
  0x24 LB: > { %s444_s2 = sadd.s32 4294967295, %s393_s6   ;;  %p323_p1 = scmp.ge.s32.totalorder %s393_s6, 1  ;;  %s393_s6 = sphi %s438_s6, %s29_s6  }
  0x25   : > { %p143_p2 = scmp.lt.s32.totalorder %s393_s6, 24 }
  0x27   : > { %p144_p3 = pnand %p323_p1, %p143_p2 }
  0x28   : > { %s324_s7 = sshll.u32 (!%p144_p3), %s444_s2, 2  ;;  %s181_s8 = sld [smem:[#allocation3 + %s444_s2]] (!%p144_p3) }
  0x29   : > { %147 = sbr.rel (%p144_p3) target bundleno = 506 (0x1fa), region = 28  ;;  %p170_p4 = scmp.lt.s32.totalorder (!%p144_p3), %s324_s7, 91 }
  0x2a   : > { %s198_s9 = sld [smem:[#allocation4 + %s444_s2]] (!%p144_p3) }
  0x2e   : > { %p182_p5 = scmp.lt.s32.totalorder (!%p144_p3), %s181_s8, 22 }
  0x30   : > { %s479_s7 = smov (!%p170_p4, %s324_s7), 91  ;;  %s481_s8 = smov (!%p182_p5, %s181_s8), 22 }
  0x31   : > { %s325_s10 = sshll.u32 %s479_s7, 3  ;;  %s460_s19 = scalar_lea.vmem %s475_s5, %s481_s8 }
  0x32   : > { %s173_s13 = scalar_lea.vmem %s473_s3, %s325_s10  ;;  %s179_s16 = scalar_lea.vmem %s474_s4, %s325_s10 }
  0x33   : > { %v186_v0 = vld [vmem:[%s173_s13] sm:$0xff]  ;;  %v187_v1 = vld [vmem:[%s173_s13 + $0x8] sm:$0xff]  ;;  %v188_v2 = vld [vmem:[%s173_s13 + $0x10] sm:$0xff]  ;;  %p328_p6 = scmp.ne.s32.totalorder %s198_s9, 1 }
  0x34   : > { %v189_v3 = vld [vmem:[%s173_s13 + $0x18] sm:$0xff]  ;;  %v190_v4 = vld [vmem:[%s179_s16] sm:$0xff]  ;;  %v191_v5 = vld [vmem:[%s179_s16 + $0x8] sm:$0xff]  ;;  %vm203_vm0 = vcmask (!%p328_p6), 0   ;;  %v398_v12 = vmov (!%p328_p6), 0.0  }
  0x35   : > { %v192_v6 = vld [vmem:[%s179_s16 + $0x10] sm:$0xff]  ;;  %v193_v7 = vld [vmem:[%s179_s16 + $0x18] sm:$0xff]  ;;  %v194_v8 = vsub.f32 %v186_v0, %v190_v4  ;;  %v195_v9 = vsub.f32 %v187_v1, %v191_v5  ;;  %202 = sbr.rel (%p328_p6) target bundleno = 60 (0x3c), region = 32  ;;  %204 = vst.msk [vmem:[%s460_s19] sm:$0x1] (!%p328_p6), %vm203_vm0, %v398_v12 }
  0x36   : > { %v196_v10 = vsub.f32 %v188_v2, %v192_v6  ;;  %v197_v11 = vsub.f32 %v189_v3, %v193_v7 }
  0x3c PF: > { %s205_s20 = sld [smem:[#allocation5 + %s444_s2]] }
  0x42   : > { %p329_p7 = scmp.ne.s32.totalorder %s205_s20, 1 }
  0x43   : > { %v211_v13 = vmul.f32 (!%p329_p7), %v194_v8, %v194_v8  ;;  %v212_v14 = vmul.f32 (!%p329_p7), %v195_v9, %v195_v9  ;;  %v213_v15 = vmul.f32 (!%p329_p7), %v196_v10, %v196_v10  ;;  %v214_v16 = vmul.f32 (!%p329_p7), %v197_v11, %v197_v11  ;;  %v210_v27 = vld [vmem:[%s460_s19] sm:$0x1] (!%p329_p7) }
  0x44   : > { %209 = sbr.rel (%p329_p7) target bundleno = 283 (0x11b), region = 36  ;;  %vm229_vm1 = vcmask (!%p329_p7), 0  }
  0x45   : > { %v215_v17 = vadd.f32 (!%p329_p7), %v212_v14, %v211_v13 }
  0x47   : > { %v216_v18 = vadd.f32 (!%p329_p7), %v215_v17, %v213_v15 }
  0x49   : > { %v217_v19 = vadd.f32 (!%p329_p7), %v216_v18, %v214_v16 }
  0x4b   : > { %218 = vadd.xlane.f32.xlu0 %v217_v19 }
  0xd8   : > { %v219_v20 = vpop.xlane.xlu0 %218 }
  0xd9   : > { %v220_v21 = vrot.slane %v219_v20, 4 }
  0xdb   : > { %v221_v22 = vadd.f32 %v220_v21, %v219_v20 }
  0xdd   : > { %v222_v23 = vrot.slane %v221_v22, 2 }
  0xdf   : > { %v223_v24 = vadd.f32 %v222_v23, %v221_v22 }
  0xe1   : > { %v224_v25 = vrot.slane %v223_v24, 1 }
  0xe3   : > { %v225_v26 = vadd.f32 %v224_v25, %v223_v24 }
  0xe5   : > { %333 = vpush %v225_v26 }
 0x116   : > { %s334_s21 = spop %333 }
 0x117   : > { %v227_v28 = vstv %s334_s21 }
 0x118   : > { %v228_v29 = vadd.f32 %v227_v28, %v210_v27 }
 0x11a   : > { %230 = vst.msk [vmem:[%s460_s19] sm:$0x1] %vm229_vm1, %v228_v29 }
 0x11b PF: > { %s231_s22 = sld [smem:[#allocation5 + %s444_s2]] }
 0x121   : > { %p330_p8 = scmp.ne.s32.totalorder %s231_s22, 0 }
 0x122   : > { %v237_v30 = vand.u32 (!%p330_p8), 2147483647, %v194_v8  ;;  %v238_v31 = vand.u32 (!%p330_p8), 2147483647, %v195_v9  ;;  %v239_v32 = vand.u32 (!%p330_p8), 2147483647, %v196_v10 }
 0x123   : > { %235 = sbr.rel (%p330_p8) target bundleno = 506 (0x1fa), region = 40  ;;  %v240_v33 = vand.u32 (!%p330_p8), 2147483647, %v197_v11  ;;  %v236_v44 = vld [vmem:[%s460_s19] sm:$0x1] (!%p330_p8)  ;;  %vm255_vm2 = vcmask (!%p330_p8), 0  }
 0x124   : > { %v241_v34 = vadd.f32 (!%p330_p8), %v238_v31, %v237_v30 }
 0x126   : > { %v242_v35 = vadd.f32 (!%p330_p8), %v241_v34, %v239_v32 }
 0x128   : > { %v243_v36 = vadd.f32 (!%p330_p8), %v242_v35, %v240_v33 }
 0x12a   : > { %244 = vadd.xlane.f32.xlu0 %v243_v36 }
 0x1b7   : > { %v245_v37 = vpop.xlane.xlu0 %244 }
 0x1b8   : > { %v246_v38 = vrot.slane %v245_v37, 4 }
 0x1ba   : > { %v247_v39 = vadd.f32 %v246_v38, %v245_v37 }
 0x1bc   : > { %v248_v40 = vrot.slane %v247_v39, 2 }
 0x1be   : > { %v249_v41 = vadd.f32 %v248_v40, %v247_v39 }
 0x1c0   : > { %v250_v42 = vrot.slane %v249_v41, 1 }
 0x1c2   : > { %v251_v43 = vadd.f32 %v250_v42, %v249_v41 }
 0x1c4   : > { %335 = vpush %v251_v43 }
 0x1f5   : > { %s336_s23 = spop %335 }
 0x1f6   : > { %v253_v45 = vstv %s336_s23 }
 0x1f7   : > { %v254_v46 = vadd.f32 %v253_v45, %v236_v44 }
 0x1f9   : > { %256 = vst.msk [vmem:[%s460_s19] sm:$0x1] %vm255_vm2, %v254_v46 }
 0x1fa PF: > { %s29_s6 = sadd.s32 1, %s393_s6  }
 0x1fb   : > { %p26_p9 = scmp.ge.s32.totalorder %s29_s6, 25  }
 0x1fd   :  { %28 = sbr.rel (!%p26_p9) target bundleno = 36 (0x24), region = 73 }

</bundles_post_ra>
